<compile_context>
chip_gen: v7x
topology: tpu7x:2x2x1
jax: 0.10.0
libtpu: 0.0.40
codegen_flags: <defaults>
</compile_context>

<pallas_src>
import functools
import math

import jax
import jax.numpy as jnp
from jax.experimental import pallas as pl
from jax.experimental.pallas import tpu as pltpu


# ----------------------------- Pallas kernel ------------------------------- #
def gpt_decoder_kernel(
    hs_ref, cos_ref, sin_ref,
    w_ln1_ref, w_qkv_ref, w_o_ref, w_ln2_ref, w_upg_ref, w_down_ref,
    out_ref,
    *, num_heads, head_dim, eps, kv_tile):
  x = hs_ref[0]                    # (S, H), native activation dtype (bf16-ready)
  S, H = x.shape
  I = w_down_ref.shape[0]
  dt = x.dtype
  half = head_dim // 2
  scale = 1.0 / math.sqrt(head_dim)
  neg = jnp.float32(-1e30)

  x32 = x.astype(jnp.float32)      # fp32 residual path (small (S,H) tensor only)

  def rms_norm(y32, w_ref):
    var = jnp.mean(y32 * y32, axis=-1, keepdims=True)
    normed = y32 * jax.lax.rsqrt(var + eps)
    return (normed * w_ref[0].astype(jnp.float32)).astype(dt)

  # ----------------------- self-attention branch --------------------------- #
  h1 = rms_norm(x32, w_ln1_ref)                                          # (S, H) dt
  # Native-dtype GEMM, fp32 accumulation (no weight upcast).
  qkv = jnp.dot(h1, w_qkv_ref[...], preferred_element_type=jnp.float32)  # (S, 3H) f32
  q = qkv[:, :H] * scale           # fold 1/sqrt(head_dim) into q, not the scores
  k = qkv[:, H:2 * H]
  v = qkv[:, 2 * H:].astype(dt)

  cos = cos_ref[0]                 # (S, hd) fp32
  sin = sin_ref[0]

  def rope(t):                     # t: (S, hd) fp32
    # rotate_half(t) = [-t2, t1]; at head_dim >= 128 this would be a
    # pltpu.roll lane-rotate; at tiny head_dim a static slice+concat is fine.
    rot = jnp.concatenate([-t[:, half:], t[:, :half]], axis=-1)
    return t * cos + rot * sin

  n_kv = S // kv_tile
  row_ids = jax.lax.broadcasted_iota(jnp.int32, (S, kv_tile), 0)

  # Per-head 2-D attention (no head transposes), flash-style online softmax
  # over KV tiles. The per-head context is folded straight into the o_proj
  # GEMM (K-reduction split over heads) -> no VMEM scratch, no masked stores.
  attn = jnp.zeros((S, H), jnp.float32)
  for h in range(num_heads):
    sl = slice(h * head_dim, (h + 1) * head_dim)
    q_h = rope(q[:, sl]).astype(dt)            # (S, hd)
    k_h = rope(k[:, sl]).astype(dt)
    v_h = v[:, sl]

    m_i = jnp.full((S, 1), neg, jnp.float32)
    l_i = jnp.zeros((S, 1), jnp.float32)
    acc = jnp.zeros((S, head_dim), jnp.float32)
    for j in range(n_kv):
      kvs = slice(j * kv_tile, (j + 1) * kv_tile)
      s = jax.lax.dot_general(q_h, k_h[kvs], (((1,), (1,)), ((), ())),
                              preferred_element_type=jnp.float32)   # (S, kv_tile)
      col_ids = j * kv_tile + jax.lax.broadcasted_iota(
          jnp.int32, (S, kv_tile), 1)
      s = jnp.where(col_ids <= row_ids, s, neg)        # in-kernel causal mask
      m_new = jnp.maximum(m_i, jnp.max(s, axis=-1, keepdims=True))
      alpha = jnp.exp(m_i - m_new)
      p = jnp.exp(s - m_new)
      l_i = alpha * l_i + jnp.sum(p, axis=-1, keepdims=True)
      acc = alpha * acc + jnp.dot(p.astype(dt), v_h[kvs],
                                  preferred_element_type=jnp.float32)
      m_i = m_new
    ctx_h = (acc * pl.reciprocal(l_i, approx=True)).astype(dt)      # EUP recip
    # Fold this head's context into o_proj: ctx_h @ W_o[h*hd:(h+1)*hd, :].
    attn = attn + jnp.dot(ctx_h, w_o_ref[sl, :],
                          preferred_element_type=jnp.float32)       # (S, H) f32

  x1 = x32 + attn                                      # first residual (fp32)

  # ------------------------------ MLP branch ------------------------------- #
  h2 = rms_norm(x1, w_ln2_ref)                                           # (S, H) dt
  upg = jnp.dot(h2, w_upg_ref[...], preferred_element_type=jnp.float32)  # (S, 2I)
  up = upg[:, :I]
  gate = upg[:, I:]
  act = (gate * jax.nn.sigmoid(gate) * up).astype(dt)                    # SiLU(gate)*up
  mlp = jnp.dot(act, w_down_ref[...], preferred_element_type=jnp.float32)
  out_ref[0] = (x1 + mlp).astype(out_ref.dtype)


# ------------------------------ host wrapper ------------------------------- #
def gpt_decoder(hidden_states, position_ids, params,
                *, num_heads, eps=1e-6, rope_theta=10000.0):
  B, S, H = hidden_states.shape
  head_dim = H // num_heads
  I = params['w_down'].shape[0]
  assert head_dim % 2 == 0

  # Rotary tables (glue; mirrors GPTRotaryEmbedding.forward). Kept fp32.
  inv_freq = 1.0 / (rope_theta ** (
      jnp.arange(0, head_dim, 2, dtype=jnp.float32) / head_dim))
  freqs = position_ids[:, :, None].astype(jnp.float32) * inv_freq[None, None, :]
  emb = jnp.concatenate([freqs, freqs], axis=-1)        # (B, S, hd)
  cos = jnp.cos(emb)
  sin = jnp.sin(emb)

  kv_tile = S if S <= 512 else 512
  assert S % kv_tile == 0

  kernel = functools.partial(gpt_decoder_kernel, num_heads=num_heads,
                             head_dim=head_dim, eps=eps, kv_tile=kv_tile)

  return pl.pallas_call(
      kernel,
      out_shape=jax.ShapeDtypeStruct((B, S, H), hidden_states.dtype),
      grid_spec=pltpu.PrefetchScalarGridSpec(
          num_scalar_prefetch=0,
          grid=(B,),
          in_specs=[
              pl.BlockSpec((1, S, H), lambda b: (b, 0, 0)),          # hidden
              pl.BlockSpec((1, S, head_dim), lambda b: (b, 0, 0)),   # cos (fp32)
              pl.BlockSpec((1, S, head_dim), lambda b: (b, 0, 0)),   # sin (fp32)
              pl.BlockSpec((1, H), lambda b: (0, 0)),                # ln1 w
              pl.BlockSpec((H, 3 * H), lambda b: (0, 0)),            # W_qkv
              pl.BlockSpec((H, H), lambda b: (0, 0)),                # W_o
              pl.BlockSpec((1, H), lambda b: (0, 0)),                # ln2 w
              pl.BlockSpec((H, 2 * I), lambda b: (0, 0)),            # W_up_g
              pl.BlockSpec((I, H), lambda b: (0, 0)),                # W_down
          ],
          out_specs=pl.BlockSpec((1, S, H), lambda b: (b, 0, 0)),
      ),
      compiler_params=pltpu.CompilerParams(
          dimension_semantics=("parallel",),
          vmem_limit_bytes=32 * 1024 * 1024),
  )(hidden_states, cos, sin,
    params['w_ln1'], params['w_qkv'], params['w_o'],
    params['w_ln2'], params['w_upg'], params['w_down'])


# --------------------------- pure-JAX reference ----------------------------- #
def gpt_decoder_ref(hidden_states, position_ids, params,
                    *, num_heads, eps=1e-6, rope_theta=10000.0):
  B, S, H = hidden_states.shape
  hd = H // num_heads
  I = params['w_down'].shape[0]
  dt = hidden_states.dtype

  def rms_norm(y, w):
    y32 = y.astype(jnp.float32)
    var = jnp.mean(y32 * y32, axis=-1, keepdims=True)
    return (w.astype(jnp.float32) * (y32 * jax.lax.rsqrt(var + eps))).astype(dt)

  inv_freq = 1.0 / (rope_theta ** (jnp.arange(0, hd, 2, dtype=jnp.float32) / hd))
  freqs = position_ids[:, :, None].astype(jnp.float32) * inv_freq[None, None, :]
  emb = jnp.concatenate([freqs, freqs], axis=-1)
  cos, sin = jnp.cos(emb)[:, None], jnp.sin(emb)[:, None]      # (B,1,S,hd) fp32

  def rot_half(t):
    return jnp.concatenate([-t[..., hd // 2:], t[..., :hd // 2]], axis=-1)

  causal = jnp.where(
      jnp.arange(S)[None, :] <= jnp.arange(S)[:, None], 0.0, -1e9
  ).astype(jnp.float32)

  residual = hidden_states
  h = rms_norm(hidden_states, params['w_ln1'][0])
  qkv = h @ params['w_qkv']
  q, k, v = jnp.split(qkv, 3, axis=-1)
  to_heads = lambda t: jnp.transpose(t.reshape(B, S, num_heads, hd), (0, 2, 1, 3))
  q, k, v = to_heads(q), to_heads(k), to_heads(v)
  q = q * cos + rot_half(q) * sin
  k = k * cos + rot_half(k) * sin
  scores = jnp.einsum('bhqd,bhkd->bhqk', q, k) / math.sqrt(hd)
  scores = scores + causal[None, None]
  probs = jax.nn.softmax(scores.astype(jnp.float32), axis=-1).astype(v.dtype)
  attn = jnp.einsum('bhqk,bhkd->bhqd', probs, v)
  attn = jnp.transpose(attn, (0, 2, 1, 3)).reshape(B, S, H).astype(dt)
  attn = attn @ params['w_o']
  x = attn + residual

  residual = x
  h = rms_norm(x, params['w_ln2'][0])
  upg = h @ params['w_upg']
  up, gate = upg[..., :I], upg[..., I:]
  mlp = (jax.nn.silu(gate) * up) @ params['w_down']
  return (mlp + residual).astype(dt)


# ---------------------------------- main ------------------------------------ #
if __name__ == "__main__":
  B, S, H = 2, 8, 32
  num_heads = 4                 # num_key_value_heads == num_heads -> n_rep = 1
  I = 64                        # intermediate_size
  eps = 1e-6

  key = jax.random.PRNGKey(0)
  ks = jax.random.split(key, 8)
  std = 0.02
  params = {
      'w_ln1':  jnp.ones((1, H), jnp.float32),
      'w_ln2':  jnp.ones((1, H), jnp.float32),
      'w_qkv':  std * jax.random.normal(ks[0], (H, 3 * H), jnp.float32),
      'w_o':    std * jax.random.normal(ks[1], (H, H), jnp.float32),
      'w_upg':  std * jax.random.normal(ks[2], (H, 2 * I), jnp.float32),
      'w_down': std * jax.random.normal(ks[3], (I, H), jnp.float32),
  }

  hidden_states = jax.random.normal(ks[4], (B, S, H), jnp.float32)
  position_ids = jnp.broadcast_to(jnp.arange(S, dtype=jnp.int32), (B, S))

  # fp32 correctness check against the pure-JAX reference (causal mask).
  out = gpt_decoder(hidden_states, position_ids, params,
                    num_heads=num_heads, eps=eps)
  out = jax.block_until_ready(out)
  ref = gpt_decoder_ref(hidden_states, position_ids, params,
                        num_heads=num_heads, eps=eps)
  assert out.shape == (B, S, H)
  assert jnp.allclose(out, ref, rtol=2e-3, atol=2e-3), (
      float(jnp.max(jnp.abs(out - ref))))

  # bf16 path: matmuls run in bf16 on the MXU with fp32 accumulation.
  hs_bf = hidden_states.astype(jnp.bfloat16)
  params_bf = {k2: v2.astype(jnp.bfloat16) for k2, v2 in params.items()}
  out_bf = gpt_decoder(hs_bf, position_ids, params_bf,
                       num_heads=num_heads, eps=eps)
  out_bf = jax.block_until_ready(out_bf)
  ref_bf = gpt_decoder_ref(hs_bf, position_ids, params_bf,
                           num_heads=num_heads, eps=eps)
  assert jnp.allclose(out_bf.astype(jnp.float32), ref_bf.astype(jnp.float32),
                      rtol=5e-2, atol=5e-2), (
      float(jnp.max(jnp.abs(out_bf.astype(jnp.float32)
                            - ref_bf.astype(jnp.float32)))))

  print("KERNEL_OK")
</pallas_src>

<mosaic_0001>
module attributes {stable_mosaic.version = 11 : i64} {
  func.func @gpt_decoder_kernel(%arg0: i32, %arg1: memref<1x8x32xf32, #tpu.memory_space<vmem>>, %arg2: memref<1x8x8xf32, #tpu.memory_space<vmem>>, %arg3: memref<1x8x8xf32, #tpu.memory_space<vmem>>, %arg4: memref<1x32xf32, #tpu.memory_space<vmem>>, %arg5: memref<32x96xf32, #tpu.memory_space<vmem>>, %arg6: memref<32x32xf32, #tpu.memory_space<vmem>>, %arg7: memref<1x32xf32, #tpu.memory_space<vmem>>, %arg8: memref<32x128xf32, #tpu.memory_space<vmem>>, %arg9: memref<64x32xf32, #tpu.memory_space<vmem>>, %arg10: memref<1x8x32xf32, #tpu.memory_space<vmem>>) attributes {dimension_semantics = [#tpu.dimension_semantics<parallel>], iteration_bounds = array<i64: 2>, scalar_prefetch = 0 : i64, scratch_operands = 0 : i64, tpu.core_type = #tpu.core_type<tc>, window_params = [{transform_indices = @transform_0, window_bounds = array<i64: 1, 8, 32>}, {transform_indices = @transform_1, window_bounds = array<i64: 1, 8, 8>}, {transform_indices = @transform_2, window_bounds = array<i64: 1, 8, 8>}, {pipeline_mode = #tpu.pipeline_mode<synchronous>, transform_indices = @transform_3, window_bounds = array<i64: 1, 32>}, {pipeline_mode = #tpu.pipeline_mode<synchronous>, transform_indices = @transform_4, window_bounds = array<i64: 32, 96>}, {pipeline_mode = #tpu.pipeline_mode<synchronous>, transform_indices = @transform_5, window_bounds = array<i64: 32, 32>}, {pipeline_mode = #tpu.pipeline_mode<synchronous>, transform_indices = @transform_6, window_bounds = array<i64: 1, 32>}, {pipeline_mode = #tpu.pipeline_mode<synchronous>, transform_indices = @transform_7, window_bounds = array<i64: 32, 128>}, {pipeline_mode = #tpu.pipeline_mode<synchronous>, transform_indices = @transform_8, window_bounds = array<i64: 64, 32>}, {transform_indices = @transform_9, window_bounds = array<i64: 1, 8, 32>}]} {
    %c0 = arith.constant 0 : index
    %c0_0 = arith.constant 0 : index
    %c0_1 = arith.constant 0 : index
    %0 = vector.load %arg1[%c0, %c0_0, %c0_1] : memref<1x8x32xf32, #tpu.memory_space<vmem>>, vector<1x8x32xf32>
    %1 = vector.shape_cast %0 : vector<1x8x32xf32> to vector<8x32xf32>
    %2 = arith.mulf %1, %1 : vector<8x32xf32>
    %cst = arith.constant dense<0.000000e+00> : vector<8xf32>
    %3 = vector.multi_reduction <add>, %2, %cst [1] : vector<8x32xf32> to vector<8xf32>
    %4 = vector.shape_cast %3 : vector<8xf32> to vector<8x1xf32>
    %cst_2 = arith.constant 3.200000e+01 : f32
    %5 = vector.broadcast %cst_2 : f32 to vector<8x1xf32>
    %6 = arith.divf %4, %5 : vector<8x1xf32>
    %cst_3 = arith.constant 9.99999997E-7 : f32
    %7 = vector.broadcast %cst_3 : f32 to vector<8x1xf32>
    %8 = arith.addf %6, %7 : vector<8x1xf32>
    %9 = math.rsqrt %8 : vector<8x1xf32>
    %10 = vector.broadcast %9 : vector<8x1xf32> to vector<8x32xf32>
    %11 = arith.mulf %1, %10 : vector<8x32xf32>
    %c0_4 = arith.constant 0 : index
    %c0_5 = arith.constant 0 : index
    %12 = vector.load %arg4[%c0_4, %c0_5] : memref<1x32xf32, #tpu.memory_space<vmem>>, vector<1x32xf32>
    %13 = vector.shape_cast %12 : vector<1x32xf32> to vector<32xf32>
    %14 = vector.shape_cast %13 : vector<32xf32> to vector<1x32xf32>
    %15 = vector.broadcast %14 : vector<1x32xf32> to vector<8x32xf32>
    %16 = arith.mulf %11, %15 : vector<8x32xf32>
    %c0_6 = arith.constant 0 : index
    %c0_7 = arith.constant 0 : index
    %17 = vector.load %arg5[%c0_6, %c0_7] : memref<32x96xf32, #tpu.memory_space<vmem>>, vector<32x96xf32>
    %cst_8 = arith.constant dense<0.000000e+00> : vector<8x96xf32>
    %18 = tpu.matmul %16, %17, %cst_8 {dimension_numbers = #tpu.dot_dimension_numbers<[1], [0], [0], [1], [0, 0, 1, 1], [], []>} : vector<8x32xf32>, vector<32x96xf32>, vector<8x96xf32> -> vector<8x96xf32>
    %19 = vector.extract_strided_slice %18 {offsets = [0, 0], sizes = [8, 32], strides = [1, 1]} : vector<8x96xf32> to vector<8x32xf32>
    %cst_9 = arith.constant 0.353553385 : f32
    %20 = vector.broadcast %cst_9 : f32 to vector<8x32xf32>
    %21 = arith.mulf %19, %20 : vector<8x32xf32>
    %22 = vector.extract_strided_slice %18 {offsets = [0, 32], sizes = [8, 32], strides = [1, 1]} : vector<8x96xf32> to vector<8x32xf32>
    %23 = vector.extract_strided_slice %18 {offsets = [0, 64], sizes = [8, 32], strides = [1, 1]} : vector<8x96xf32> to vector<8x32xf32>
    %c0_10 = arith.constant 0 : index
    %c0_11 = arith.constant 0 : index
    %c0_12 = arith.constant 0 : index
    %24 = vector.load %arg2[%c0_10, %c0_11, %c0_12] : memref<1x8x8xf32, #tpu.memory_space<vmem>>, vector<1x8x8xf32>
    %25 = vector.shape_cast %24 : vector<1x8x8xf32> to vector<8x8xf32>
    %c0_13 = arith.constant 0 : index
    %c0_14 = arith.constant 0 : index
    %c0_15 = arith.constant 0 : index
    %26 = vector.load %arg3[%c0_13, %c0_14, %c0_15] : memref<1x8x8xf32, #tpu.memory_space<vmem>>, vector<1x8x8xf32>
    %27 = vector.shape_cast %26 : vector<1x8x8xf32> to vector<8x8xf32>
    %28 = tpu.iota {dimensions = array<i32: 0>} : vector<8x8xi32>
    %cst_16 = arith.constant 0.000000e+00 : f32
    %29 = vector.broadcast %cst_16 : f32 to vector<8x32xf32>
    %30 = vector.extract_strided_slice %21 {offsets = [0, 0], sizes = [8, 8], strides = [1, 1]} : vector<8x32xf32> to vector<8x8xf32>
    %31 = vector.extract_strided_slice %30 {offsets = [0, 4], sizes = [8, 4], strides = [1, 1]} : vector<8x8xf32> to vector<8x4xf32>
    %cst_17 = arith.constant 0.000000e+00 : f32
    %32 = vector.broadcast %cst_17 : f32 to vector<8x4xf32>
    %33 = arith.subf %32, %31 : vector<8x4xf32>
    %34 = vector.extract_strided_slice %30 {offsets = [0, 0], sizes = [8, 4], strides = [1, 1]} : vector<8x8xf32> to vector<8x4xf32>
    %35 = tpu.concatenate %33, %34 in 1 : vector<8x4xf32>, vector<8x4xf32> -> vector<8x8xf32>
    %36 = arith.mulf %30, %25 : vector<8x8xf32>
    %37 = arith.mulf %35, %27 : vector<8x8xf32>
    %38 = arith.addf %36, %37 : vector<8x8xf32>
    %39 = vector.extract_strided_slice %22 {offsets = [0, 0], sizes = [8, 8], strides = [1, 1]} : vector<8x32xf32> to vector<8x8xf32>
    %40 = vector.extract_strided_slice %39 {offsets = [0, 4], sizes = [8, 4], strides = [1, 1]} : vector<8x8xf32> to vector<8x4xf32>
    %cst_18 = arith.constant 0.000000e+00 : f32
    %41 = vector.broadcast %cst_18 : f32 to vector<8x4xf32>
    %42 = arith.subf %41, %40 : vector<8x4xf32>
    %43 = vector.extract_strided_slice %39 {offsets = [0, 0], sizes = [8, 4], strides = [1, 1]} : vector<8x8xf32> to vector<8x4xf32>
    %44 = tpu.concatenate %42, %43 in 1 : vector<8x4xf32>, vector<8x4xf32> -> vector<8x8xf32>
    %45 = arith.mulf %39, %25 : vector<8x8xf32>
    %46 = arith.mulf %44, %27 : vector<8x8xf32>
    %47 = arith.addf %45, %46 : vector<8x8xf32>
    %48 = vector.extract_strided_slice %23 {offsets = [0, 0], sizes = [8, 8], strides = [1, 1]} : vector<8x32xf32> to vector<8x8xf32>
    %cst_19 = arith.constant -1.000000e+30 : f32
    %49 = vector.broadcast %cst_19 : f32 to vector<8x1xf32>
    %cst_20 = arith.constant 0.000000e+00 : f32
    %50 = vector.broadcast %cst_20 : f32 to vector<8x1xf32>
    %cst_21 = arith.constant 0.000000e+00 : f32
    %51 = vector.broadcast %cst_21 : f32 to vector<8x8xf32>
    %cst_22 = arith.constant dense<0.000000e+00> : vector<8x8xf32>
    %52 = tpu.matmul %38, %47, %cst_22 {dimension_numbers = #tpu.dot_dimension_numbers<[1], [1], [0], [0], [0, 0, 1, 0], [], []>} : vector<8x8xf32>, vector<8x8xf32>, vector<8x8xf32> -> vector<8x8xf32>
    %53 = tpu.iota {dimensions = array<i32: 1>} : vector<8x8xi32>
    %c0_i32 = arith.constant 0 : i32
    %54 = vector.broadcast %c0_i32 : i32 to vector<8x8xi32>
    %55 = arith.addi %54, %53 : vector<8x8xi32>
    %56 = arith.cmpi sle, %55, %28 : vector<8x8xi32>
    %cst_23 = arith.constant -1.000000e+30 : f32
    %57 = vector.broadcast %cst_23 : f32 to vector<8x8xf32>
    %58 = arith.select %56, %52, %57 : vector<8x8xi1>, vector<8x8xf32>
    %cst_24 = arith.constant dense<0xFF800000> : vector<8xf32>
    %59 = vector.multi_reduction <maximumf>, %58, %cst_24 [1] : vector<8x8xf32> to vector<8xf32>
    %60 = vector.shape_cast %59 : vector<8xf32> to vector<8x1xf32>
    %61 = arith.maximumf %49, %60 : vector<8x1xf32>
    %62 = arith.subf %49, %61 : vector<8x1xf32>
    %63 = math.exp %62 : vector<8x1xf32>
    %64 = vector.broadcast %61 : vector<8x1xf32> to vector<8x8xf32>
    %65 = arith.subf %58, %64 : vector<8x8xf32>
    %66 = math.exp %65 : vector<8x8xf32>
    %67 = arith.mulf %63, %50 : vector<8x1xf32>
    %cst_25 = arith.constant dense<0.000000e+00> : vector<8xf32>
    %68 = vector.multi_reduction <add>, %66, %cst_25 [1] : vector<8x8xf32> to vector<8xf32>
    %69 = vector.shape_cast %68 : vector<8xf32> to vector<8x1xf32>
    %70 = arith.addf %67, %69 : vector<8x1xf32>
    %71 = vector.broadcast %63 : vector<8x1xf32> to vector<8x8xf32>
    %72 = arith.mulf %71, %51 : vector<8x8xf32>
    %cst_26 = arith.constant dense<0.000000e+00> : vector<8x8xf32>
    %73 = tpu.matmul %66, %48, %cst_26 {dimension_numbers = #tpu.dot_dimension_numbers<[1], [0], [0], [1], [0, 0, 1, 1], [], []>} : vector<8x8xf32>, vector<8x8xf32>, vector<8x8xf32> -> vector<8x8xf32>
    %74 = arith.addf %72, %73 : vector<8x8xf32>
    %75 = tpu.reciprocal %70 {approx = true} : vector<8x1xf32> -> vector<8x1xf32>
    %76 = vector.broadcast %75 : vector<8x1xf32> to vector<8x8xf32>
    %77 = arith.mulf %74, %76 : vector<8x8xf32>
    %c0_27 = arith.constant 0 : index
    %c0_28 = arith.constant 0 : index
    %78 = vector.load %arg6[%c0_27, %c0_28] : memref<32x32xf32, #tpu.memory_space<vmem>>, vector<8x32xf32>
    %cst_29 = arith.constant dense<0.000000e+00> : vector<8x32xf32>
    %79 = tpu.matmul %77, %78, %cst_29 {dimension_numbers = #tpu.dot_dimension_numbers<[1], [0], [0], [1], [0, 0, 1, 1], [], []>} : vector<8x8xf32>, vector<8x32xf32>, vector<8x32xf32> -> vector<8x32xf32>
    %80 = arith.addf %29, %79 : vector<8x32xf32>
    %81 = vector.extract_strided_slice %21 {offsets = [0, 8], sizes = [8, 8], strides = [1, 1]} : vector<8x32xf32> to vector<8x8xf32>
    %82 = vector.extract_strided_slice %81 {offsets = [0, 4], sizes = [8, 4], strides = [1, 1]} : vector<8x8xf32> to vector<8x4xf32>
    %cst_30 = arith.constant 0.000000e+00 : f32
    %83 = vector.broadcast %cst_30 : f32 to vector<8x4xf32>
    %84 = arith.subf %83, %82 : vector<8x4xf32>
    %85 = vector.extract_strided_slice %81 {offsets = [0, 0], sizes = [8, 4], strides = [1, 1]} : vector<8x8xf32> to vector<8x4xf32>
    %86 = tpu.concatenate %84, %85 in 1 : vector<8x4xf32>, vector<8x4xf32> -> vector<8x8xf32>
    %87 = arith.mulf %81, %25 : vector<8x8xf32>
    %88 = arith.mulf %86, %27 : vector<8x8xf32>
    %89 = arith.addf %87, %88 : vector<8x8xf32>
    %90 = vector.extract_strided_slice %22 {offsets = [0, 8], sizes = [8, 8], strides = [1, 1]} : vector<8x32xf32> to vector<8x8xf32>
    %91 = vector.extract_strided_slice %90 {offsets = [0, 4], sizes = [8, 4], strides = [1, 1]} : vector<8x8xf32> to vector<8x4xf32>
    %cst_31 = arith.constant 0.000000e+00 : f32
    %92 = vector.broadcast %cst_31 : f32 to vector<8x4xf32>
    %93 = arith.subf %92, %91 : vector<8x4xf32>
    %94 = vector.extract_strided_slice %90 {offsets = [0, 0], sizes = [8, 4], strides = [1, 1]} : vector<8x8xf32> to vector<8x4xf32>
    %95 = tpu.concatenate %93, %94 in 1 : vector<8x4xf32>, vector<8x4xf32> -> vector<8x8xf32>
    %96 = arith.mulf %90, %25 : vector<8x8xf32>
    %97 = arith.mulf %95, %27 : vector<8x8xf32>
    %98 = arith.addf %96, %97 : vector<8x8xf32>
    %99 = vector.extract_strided_slice %23 {offsets = [0, 8], sizes = [8, 8], strides = [1, 1]} : vector<8x32xf32> to vector<8x8xf32>
    %cst_32 = arith.constant -1.000000e+30 : f32
    %100 = vector.broadcast %cst_32 : f32 to vector<8x1xf32>
    %cst_33 = arith.constant 0.000000e+00 : f32
    %101 = vector.broadcast %cst_33 : f32 to vector<8x1xf32>
    %cst_34 = arith.constant 0.000000e+00 : f32
    %102 = vector.broadcast %cst_34 : f32 to vector<8x8xf32>
    %cst_35 = arith.constant dense<0.000000e+00> : vector<8x8xf32>
    %103 = tpu.matmul %89, %98, %cst_35 {dimension_numbers = #tpu.dot_dimension_numbers<[1], [1], [0], [0], [0, 0, 1, 0], [], []>} : vector<8x8xf32>, vector<8x8xf32>, vector<8x8xf32> -> vector<8x8xf32>
    %104 = tpu.iota {dimensions = array<i32: 1>} : vector<8x8xi32>
    %c0_i32_36 = arith.constant 0 : i32
    %105 = vector.broadcast %c0_i32_36 : i32 to vector<8x8xi32>
    %106 = arith.addi %105, %104 : vector<8x8xi32>
    %107 = arith.cmpi sle, %106, %28 : vector<8x8xi32>
    %cst_37 = arith.constant -1.000000e+30 : f32
    %108 = vector.broadcast %cst_37 : f32 to vector<8x8xf32>
    %109 = arith.select %107, %103, %108 : vector<8x8xi1>, vector<8x8xf32>
    %cst_38 = arith.constant dense<0xFF800000> : vector<8xf32>
    %110 = vector.multi_reduction <maximumf>, %109, %cst_38 [1] : vector<8x8xf32> to vector<8xf32>
    %111 = vector.shape_cast %110 : vector<8xf32> to vector<8x1xf32>
    %112 = arith.maximumf %100, %111 : vector<8x1xf32>
    %113 = arith.subf %100, %112 : vector<8x1xf32>
    %114 = math.exp %113 : vector<8x1xf32>
    %115 = vector.broadcast %112 : vector<8x1xf32> to vector<8x8xf32>
    %116 = arith.subf %109, %115 : vector<8x8xf32>
    %117 = math.exp %116 : vector<8x8xf32>
    %118 = arith.mulf %114, %101 : vector<8x1xf32>
    %cst_39 = arith.constant dense<0.000000e+00> : vector<8xf32>
    %119 = vector.multi_reduction <add>, %117, %cst_39 [1] : vector<8x8xf32> to vector<8xf32>
    %120 = vector.shape_cast %119 : vector<8xf32> to vector<8x1xf32>
    %121 = arith.addf %118, %120 : vector<8x1xf32>
    %122 = vector.broadcast %114 : vector<8x1xf32> to vector<8x8xf32>
    %123 = arith.mulf %122, %102 : vector<8x8xf32>
    %cst_40 = arith.constant dense<0.000000e+00> : vector<8x8xf32>
    %124 = tpu.matmul %117, %99, %cst_40 {dimension_numbers = #tpu.dot_dimension_numbers<[1], [0], [0], [1], [0, 0, 1, 1], [], []>} : vector<8x8xf32>, vector<8x8xf32>, vector<8x8xf32> -> vector<8x8xf32>
    %125 = arith.addf %123, %124 : vector<8x8xf32>
    %126 = tpu.reciprocal %121 {approx = true} : vector<8x1xf32> -> vector<8x1xf32>
    %127 = vector.broadcast %126 : vector<8x1xf32> to vector<8x8xf32>
    %128 = arith.mulf %125, %127 : vector<8x8xf32>
    %c8 = arith.constant 8 : index
    %c0_41 = arith.constant 0 : index
    %129 = vector.load %arg6[%c8, %c0_41] : memref<32x32xf32, #tpu.memory_space<vmem>>, vector<8x32xf32>
    %cst_42 = arith.constant dense<0.000000e+00> : vector<8x32xf32>
    %130 = tpu.matmul %128, %129, %cst_42 {dimension_numbers = #tpu.dot_dimension_numbers<[1], [0], [0], [1], [0, 0, 1, 1], [], []>} : vector<8x8xf32>, vector<8x32xf32>, vector<8x32xf32> -> vector<8x32xf32>
    %131 = arith.addf %80, %130 : vector<8x32xf32>
    %132 = vector.extract_strided_slice %21 {offsets = [0, 16], sizes = [8, 8], strides = [1, 1]} : vector<8x32xf32> to vector<8x8xf32>
    %133 = vector.extract_strided_slice %132 {offsets = [0, 4], sizes = [8, 4], strides = [1, 1]} : vector<8x8xf32> to vector<8x4xf32>
    %cst_43 = arith.constant 0.000000e+00 : f32
    %134 = vector.broadcast %cst_43 : f32 to vector<8x4xf32>
    %135 = arith.subf %134, %133 : vector<8x4xf32>
    %136 = vector.extract_strided_slice %132 {offsets = [0, 0], sizes = [8, 4], strides = [1, 1]} : vector<8x8xf32> to vector<8x4xf32>
    %137 = tpu.concatenate %135, %136 in 1 : vector<8x4xf32>, vector<8x4xf32> -> vector<8x8xf32>
    %138 = arith.mulf %132, %25 : vector<8x8xf32>
    %139 = arith.mulf %137, %27 : vector<8x8xf32>
    %140 = arith.addf %138, %139 : vector<8x8xf32>
    %141 = vector.extract_strided_slice %22 {offsets = [0, 16], sizes = [8, 8], strides = [1, 1]} : vector<8x32xf32> to vector<8x8xf32>
    %142 = vector.extract_strided_slice %141 {offsets = [0, 4], sizes = [8, 4], strides = [1, 1]} : vector<8x8xf32> to vector<8x4xf32>
    %cst_44 = arith.constant 0.000000e+00 : f32
    %143 = vector.broadcast %cst_44 : f32 to vector<8x4xf32>
    %144 = arith.subf %143, %142 : vector<8x4xf32>
    %145 = vector.extract_strided_slice %141 {offsets = [0, 0], sizes = [8, 4], strides = [1, 1]} : vector<8x8xf32> to vector<8x4xf32>
    %146 = tpu.concatenate %144, %145 in 1 : vector<8x4xf32>, vector<8x4xf32> -> vector<8x8xf32>
    %147 = arith.mulf %141, %25 : vector<8x8xf32>
    %148 = arith.mulf %146, %27 : vector<8x8xf32>
    %149 = arith.addf %147, %148 : vector<8x8xf32>
    %150 = vector.extract_strided_slice %23 {offsets = [0, 16], sizes = [8, 8], strides = [1, 1]} : vector<8x32xf32> to vector<8x8xf32>
    %cst_45 = arith.constant -1.000000e+30 : f32
    %151 = vector.broadcast %cst_45 : f32 to vector<8x1xf32>
    %cst_46 = arith.constant 0.000000e+00 : f32
    %152 = vector.broadcast %cst_46 : f32 to vector<8x1xf32>
    %cst_47 = arith.constant 0.000000e+00 : f32
    %153 = vector.broadcast %cst_47 : f32 to vector<8x8xf32>
    %cst_48 = arith.constant dense<0.000000e+00> : vector<8x8xf32>
    %154 = tpu.matmul %140, %149, %cst_48 {dimension_numbers = #tpu.dot_dimension_numbers<[1], [1], [0], [0], [0, 0, 1, 0], [], []>} : vector<8x8xf32>, vector<8x8xf32>, vector<8x8xf32> -> vector<8x8xf32>
    %155 = tpu.iota {dimensions = array<i32: 1>} : vector<8x8xi32>
    %c0_i32_49 = arith.constant 0 : i32
    %156 = vector.broadcast %c0_i32_49 : i32 to vector<8x8xi32>
    %157 = arith.addi %156, %155 : vector<8x8xi32>
    %158 = arith.cmpi sle, %157, %28 : vector<8x8xi32>
    %cst_50 = arith.constant -1.000000e+30 : f32
    %159 = vector.broadcast %cst_50 : f32 to vector<8x8xf32>
    %160 = arith.select %158, %154, %159 : vector<8x8xi1>, vector<8x8xf32>
    %cst_51 = arith.constant dense<0xFF800000> : vector<8xf32>
    %161 = vector.multi_reduction <maximumf>, %160, %cst_51 [1] : vector<8x8xf32> to vector<8xf32>
    %162 = vector.shape_cast %161 : vector<8xf32> to vector<8x1xf32>
    %163 = arith.maximumf %151, %162 : vector<8x1xf32>
    %164 = arith.subf %151, %163 : vector<8x1xf32>
    %165 = math.exp %164 : vector<8x1xf32>
    %166 = vector.broadcast %163 : vector<8x1xf32> to vector<8x8xf32>
    %167 = arith.subf %160, %166 : vector<8x8xf32>
    %168 = math.exp %167 : vector<8x8xf32>
    %169 = arith.mulf %165, %152 : vector<8x1xf32>
    %cst_52 = arith.constant dense<0.000000e+00> : vector<8xf32>
    %170 = vector.multi_reduction <add>, %168, %cst_52 [1] : vector<8x8xf32> to vector<8xf32>
    %171 = vector.shape_cast %170 : vector<8xf32> to vector<8x1xf32>
    %172 = arith.addf %169, %171 : vector<8x1xf32>
    %173 = vector.broadcast %165 : vector<8x1xf32> to vector<8x8xf32>
    %174 = arith.mulf %173, %153 : vector<8x8xf32>
    %cst_53 = arith.constant dense<0.000000e+00> : vector<8x8xf32>
    %175 = tpu.matmul %168, %150, %cst_53 {dimension_numbers = #tpu.dot_dimension_numbers<[1], [0], [0], [1], [0, 0, 1, 1], [], []>} : vector<8x8xf32>, vector<8x8xf32>, vector<8x8xf32> -> vector<8x8xf32>
    %176 = arith.addf %174, %175 : vector<8x8xf32>
    %177 = tpu.reciprocal %172 {approx = true} : vector<8x1xf32> -> vector<8x1xf32>
    %178 = vector.broadcast %177 : vector<8x1xf32> to vector<8x8xf32>
    %179 = arith.mulf %176, %178 : vector<8x8xf32>
    %c16 = arith.constant 16 : index
    %c0_54 = arith.constant 0 : index
    %180 = vector.load %arg6[%c16, %c0_54] : memref<32x32xf32, #tpu.memory_space<vmem>>, vector<8x32xf32>
    %cst_55 = arith.constant dense<0.000000e+00> : vector<8x32xf32>
    %181 = tpu.matmul %179, %180, %cst_55 {dimension_numbers = #tpu.dot_dimension_numbers<[1], [0], [0], [1], [0, 0, 1, 1], [], []>} : vector<8x8xf32>, vector<8x32xf32>, vector<8x32xf32> -> vector<8x32xf32>
    %182 = arith.addf %131, %181 : vector<8x32xf32>
    %183 = vector.extract_strided_slice %21 {offsets = [0, 24], sizes = [8, 8], strides = [1, 1]} : vector<8x32xf32> to vector<8x8xf32>
    %184 = vector.extract_strided_slice %183 {offsets = [0, 4], sizes = [8, 4], strides = [1, 1]} : vector<8x8xf32> to vector<8x4xf32>
    %cst_56 = arith.constant 0.000000e+00 : f32
    %185 = vector.broadcast %cst_56 : f32 to vector<8x4xf32>
    %186 = arith.subf %185, %184 : vector<8x4xf32>
    %187 = vector.extract_strided_slice %183 {offsets = [0, 0], sizes = [8, 4], strides = [1, 1]} : vector<8x8xf32> to vector<8x4xf32>
    %188 = tpu.concatenate %186, %187 in 1 : vector<8x4xf32>, vector<8x4xf32> -> vector<8x8xf32>
    %189 = arith.mulf %183, %25 : vector<8x8xf32>
    %190 = arith.mulf %188, %27 : vector<8x8xf32>
    %191 = arith.addf %189, %190 : vector<8x8xf32>
    %192 = vector.extract_strided_slice %22 {offsets = [0, 24], sizes = [8, 8], strides = [1, 1]} : vector<8x32xf32> to vector<8x8xf32>
    %193 = vector.extract_strided_slice %192 {offsets = [0, 4], sizes = [8, 4], strides = [1, 1]} : vector<8x8xf32> to vector<8x4xf32>
    %cst_57 = arith.constant 0.000000e+00 : f32
    %194 = vector.broadcast %cst_57 : f32 to vector<8x4xf32>
    %195 = arith.subf %194, %193 : vector<8x4xf32>
    %196 = vector.extract_strided_slice %192 {offsets = [0, 0], sizes = [8, 4], strides = [1, 1]} : vector<8x8xf32> to vector<8x4xf32>
    %197 = tpu.concatenate %195, %196 in 1 : vector<8x4xf32>, vector<8x4xf32> -> vector<8x8xf32>
    %198 = arith.mulf %192, %25 : vector<8x8xf32>
    %199 = arith.mulf %197, %27 : vector<8x8xf32>
    %200 = arith.addf %198, %199 : vector<8x8xf32>
    %201 = vector.extract_strided_slice %23 {offsets = [0, 24], sizes = [8, 8], strides = [1, 1]} : vector<8x32xf32> to vector<8x8xf32>
    %cst_58 = arith.constant -1.000000e+30 : f32
    %202 = vector.broadcast %cst_58 : f32 to vector<8x1xf32>
    %cst_59 = arith.constant 0.000000e+00 : f32
    %203 = vector.broadcast %cst_59 : f32 to vector<8x1xf32>
    %cst_60 = arith.constant 0.000000e+00 : f32
    %204 = vector.broadcast %cst_60 : f32 to vector<8x8xf32>
    %cst_61 = arith.constant dense<0.000000e+00> : vector<8x8xf32>
    %205 = tpu.matmul %191, %200, %cst_61 {dimension_numbers = #tpu.dot_dimension_numbers<[1], [1], [0], [0], [0, 0, 1, 0], [], []>} : vector<8x8xf32>, vector<8x8xf32>, vector<8x8xf32> -> vector<8x8xf32>
    %206 = tpu.iota {dimensions = array<i32: 1>} : vector<8x8xi32>
    %c0_i32_62 = arith.constant 0 : i32
    %207 = vector.broadcast %c0_i32_62 : i32 to vector<8x8xi32>
    %208 = arith.addi %207, %206 : vector<8x8xi32>
    %209 = arith.cmpi sle, %208, %28 : vector<8x8xi32>
    %cst_63 = arith.constant -1.000000e+30 : f32
    %210 = vector.broadcast %cst_63 : f32 to vector<8x8xf32>
    %211 = arith.select %209, %205, %210 : vector<8x8xi1>, vector<8x8xf32>
    %cst_64 = arith.constant dense<0xFF800000> : vector<8xf32>
    %212 = vector.multi_reduction <maximumf>, %211, %cst_64 [1] : vector<8x8xf32> to vector<8xf32>
    %213 = vector.shape_cast %212 : vector<8xf32> to vector<8x1xf32>
    %214 = arith.maximumf %202, %213 : vector<8x1xf32>
    %215 = arith.subf %202, %214 : vector<8x1xf32>
    %216 = math.exp %215 : vector<8x1xf32>
    %217 = vector.broadcast %214 : vector<8x1xf32> to vector<8x8xf32>
    %218 = arith.subf %211, %217 : vector<8x8xf32>
    %219 = math.exp %218 : vector<8x8xf32>
    %220 = arith.mulf %216, %203 : vector<8x1xf32>
    %cst_65 = arith.constant dense<0.000000e+00> : vector<8xf32>
    %221 = vector.multi_reduction <add>, %219, %cst_65 [1] : vector<8x8xf32> to vector<8xf32>
    %222 = vector.shape_cast %221 : vector<8xf32> to vector<8x1xf32>
    %223 = arith.addf %220, %222 : vector<8x1xf32>
    %224 = vector.broadcast %216 : vector<8x1xf32> to vector<8x8xf32>
    %225 = arith.mulf %224, %204 : vector<8x8xf32>
    %cst_66 = arith.constant dense<0.000000e+00> : vector<8x8xf32>
    %226 = tpu.matmul %219, %201, %cst_66 {dimension_numbers = #tpu.dot_dimension_numbers<[1], [0], [0], [1], [0, 0, 1, 1], [], []>} : vector<8x8xf32>, vector<8x8xf32>, vector<8x8xf32> -> vector<8x8xf32>
    %227 = arith.addf %225, %226 : vector<8x8xf32>
    %228 = tpu.reciprocal %223 {approx = true} : vector<8x1xf32> -> vector<8x1xf32>
    %229 = vector.broadcast %228 : vector<8x1xf32> to vector<8x8xf32>
    %230 = arith.mulf %227, %229 : vector<8x8xf32>
    %c24 = arith.constant 24 : index
    %c0_67 = arith.constant 0 : index
    %231 = vector.load %arg6[%c24, %c0_67] : memref<32x32xf32, #tpu.memory_space<vmem>>, vector<8x32xf32>
    %cst_68 = arith.constant dense<0.000000e+00> : vector<8x32xf32>
    %232 = tpu.matmul %230, %231, %cst_68 {dimension_numbers = #tpu.dot_dimension_numbers<[1], [0], [0], [1], [0, 0, 1, 1], [], []>} : vector<8x8xf32>, vector<8x32xf32>, vector<8x32xf32> -> vector<8x32xf32>
    %233 = arith.addf %182, %232 : vector<8x32xf32>
    %234 = arith.addf %1, %233 : vector<8x32xf32>
    %235 = arith.mulf %234, %234 : vector<8x32xf32>
    %cst_69 = arith.constant dense<0.000000e+00> : vector<8xf32>
    %236 = vector.multi_reduction <add>, %235, %cst_69 [1] : vector<8x32xf32> to vector<8xf32>
    %237 = vector.shape_cast %236 : vector<8xf32> to vector<8x1xf32>
    %cst_70 = arith.constant 3.200000e+01 : f32
    %238 = vector.broadcast %cst_70 : f32 to vector<8x1xf32>
    %239 = arith.divf %237, %238 : vector<8x1xf32>
    %cst_71 = arith.constant 9.99999997E-7 : f32
    %240 = vector.broadcast %cst_71 : f32 to vector<8x1xf32>
    %241 = arith.addf %239, %240 : vector<8x1xf32>
    %242 = math.rsqrt %241 : vector<8x1xf32>
    %243 = vector.broadcast %242 : vector<8x1xf32> to vector<8x32xf32>
    %244 = arith.mulf %234, %243 : vector<8x32xf32>
    %c0_72 = arith.constant 0 : index
    %c0_73 = arith.constant 0 : index
    %245 = vector.load %arg7[%c0_72, %c0_73] : memref<1x32xf32, #tpu.memory_space<vmem>>, vector<1x32xf32>
    %246 = vector.shape_cast %245 : vector<1x32xf32> to vector<32xf32>
    %247 = vector.shape_cast %246 : vector<32xf32> to vector<1x32xf32>
    %248 = vector.broadcast %247 : vector<1x32xf32> to vector<8x32xf32>
    %249 = arith.mulf %244, %248 : vector<8x32xf32>
    %c0_74 = arith.constant 0 : index
    %c0_75 = arith.constant 0 : index
    %250 = vector.load %arg8[%c0_74, %c0_75] : memref<32x128xf32, #tpu.memory_space<vmem>>, vector<32x128xf32>
    %cst_76 = arith.constant dense<0.000000e+00> : vector<8x128xf32>
    %251 = tpu.matmul %249, %250, %cst_76 {dimension_numbers = #tpu.dot_dimension_numbers<[1], [0], [0], [1], [0, 0, 1, 1], [], []>} : vector<8x32xf32>, vector<32x128xf32>, vector<8x128xf32> -> vector<8x128xf32>
    %252 = vector.extract_strided_slice %251 {offsets = [0, 0], sizes = [8, 64], strides = [1, 1]} : vector<8x128xf32> to vector<8x64xf32>
    %253 = vector.extract_strided_slice %251 {offsets = [0, 64], sizes = [8, 64], strides = [1, 1]} : vector<8x128xf32> to vector<8x64xf32>
    %254 = arith.negf %253 : vector<8x64xf32>
    %255 = math.exp %254 : vector<8x64xf32>
    %cst_77 = arith.constant 1.000000e+00 : f32
    %256 = vector.broadcast %cst_77 : f32 to vector<8x64xf32>
    %257 = arith.addf %256, %255 : vector<8x64xf32>
    %258 = arith.divf %256, %257 : vector<8x64xf32>
    %259 = arith.mulf %253, %258 : vector<8x64xf32>
    %260 = arith.mulf %259, %252 : vector<8x64xf32>
    %c0_78 = arith.constant 0 : index
    %c0_79 = arith.constant 0 : index
    %261 = vector.load %arg9[%c0_78, %c0_79] : memref<64x32xf32, #tpu.memory_space<vmem>>, vector<64x32xf32>
    %cst_80 = arith.constant dense<0.000000e+00> : vector<8x32xf32>
    %262 = tpu.matmul %260, %261, %cst_80 {dimension_numbers = #tpu.dot_dimension_numbers<[1], [0], [0], [1], [0, 0, 1, 1], [], []>} : vector<8x64xf32>, vector<64x32xf32>, vector<8x32xf32> -> vector<8x32xf32>
    %263 = arith.addf %234, %262 : vector<8x32xf32>
    %c0_81 = arith.constant 0 : index
    %c0_82 = arith.constant 0 : index
    %c0_83 = arith.constant 0 : index
    %264 = vector.load %arg10[%c0_81, %c0_82, %c0_83] : memref<1x8x32xf32, #tpu.memory_space<vmem>>, vector<1x8x32xf32>
    %265 = vector.shape_cast %264 : vector<1x8x32xf32> to vector<8x32xf32>
    %266 = vector.shape_cast %263 : vector<8x32xf32> to vector<1x8x32xf32>
    tpu.vector_store %arg10[%c0_81, %c0_82, %c0_83], %266 {strides = array<i32>} : memref<1x8x32xf32, #tpu.memory_space<vmem>>, vector<1x8x32xf32>,
    return
  }
  func.func @transform_0(%arg0: i32) -> (i32, i32, i32) {
    %c0_i32 = arith.constant 0 : i32
    %c0_i32_0 = arith.constant 0 : i32
    %c0_i32_1 = arith.constant 0 : i32
    return %arg0, %c0_i32, %c0_i32_0 : i32, i32, i32
  }
  func.func @transform_1(%arg0: i32) -> (i32, i32, i32) {
    %c0_i32 = arith.constant 0 : i32
    %c0_i32_0 = arith.constant 0 : i32
    %c0_i32_1 = arith.constant 0 : i32
    return %arg0, %c0_i32, %c0_i32_0 : i32, i32, i32
  }
  func.func @transform_2(%arg0: i32) -> (i32, i32, i32) {
    %c0_i32 = arith.constant 0 : i32
    %c0_i32_0 = arith.constant 0 : i32
    %c0_i32_1 = arith.constant 0 : i32
    return %arg0, %c0_i32, %c0_i32_0 : i32, i32, i32
  }
  func.func @transform_3(%arg0: i32) -> (i32, i32) {
    %c0_i32 = arith.constant 0 : i32
    %c0_i32_0 = arith.constant 0 : i32
    %c0_i32_1 = arith.constant 0 : i32
    return %c0_i32, %c0_i32_0 : i32, i32
  }
  func.func @transform_4(%arg0: i32) -> (i32, i32) {
    %c0_i32 = arith.constant 0 : i32
    %c0_i32_0 = arith.constant 0 : i32
    %c0_i32_1 = arith.constant 0 : i32
    return %c0_i32, %c0_i32_0 : i32, i32
  }
  func.func @transform_5(%arg0: i32) -> (i32, i32) {
    %c0_i32 = arith.constant 0 : i32
    %c0_i32_0 = arith.constant 0 : i32
    %c0_i32_1 = arith.constant 0 : i32
    return %c0_i32, %c0_i32_0 : i32, i32
  }
  func.func @transform_6(%arg0: i32) -> (i32, i32) {
    %c0_i32 = arith.constant 0 : i32
    %c0_i32_0 = arith.constant 0 : i32
    %c0_i32_1 = arith.constant 0 : i32
    return %c0_i32, %c0_i32_0 : i32, i32
  }
  func.func @transform_7(%arg0: i32) -> (i32, i32) {
    %c0_i32 = arith.constant 0 : i32
    %c0_i32_0 = arith.constant 0 : i32
    %c0_i32_1 = arith.constant 0 : i32
    return %c0_i32, %c0_i32_0 : i32, i32
  }
  func.func @transform_8(%arg0: i32) -> (i32, i32) {
    %c0_i32 = arith.constant 0 : i32
    %c0_i32_0 = arith.constant 0 : i32
    %c0_i32_1 = arith.constant 0 : i32
    return %c0_i32, %c0_i32_0 : i32, i32
  }
  func.func @transform_9(%arg0: i32) -> (i32, i32, i32) {
    %c0_i32 = arith.constant 0 : i32
    %c0_i32_0 = arith.constant 0 : i32
    %c0_i32_1 = arith.constant 0 : i32
    return %arg0, %c0_i32, %c0_i32_0 : i32, i32, i32
  }
}

</mosaic_0001>

<bundles_post_ra>
// kernel: tpu_custom_call.1
= control target key start
LH: loop header
LB: loop body
LE: loop exit
PB: predicated region body
PF: predicated region fallthrough
CT: control target
= control target key end

     0   :  { %s3043_s0 = inlined_call_operand.hbm [shape: f32[2,8,32], index: 0, kind: input, shape index: {}]   ;;  %s3044_s1 = inlined_call_operand.hbm [shape: f32[2,8,8], index: 1, kind: input, shape index: {}]   ;;  %s3045_s2 = inlined_call_operand.hbm [shape: f32[2,8,8], index: 2, kind: input, shape index: {}]   ;;  %s3046_s3 = inlined_call_operand.vmem [shape: f32[1,32], index: 3, kind: input, shape index: {}]   ;;  %s3047_s4 = inlined_call_operand.vmem [shape: f32[32,96], index: 4, kind: input, shape index: {}]   ;;  %s3048_s5 = inlined_call_operand.vmem [shape: f32[32,32], index: 5, kind: input, shape index: {}]   ;;  %s3049_s6 = inlined_call_operand.vmem [shape: f32[1,32], index: 6, kind: input, shape index: {}]   ;;  %s3050_s7 = inlined_call_operand.vmem [shape: f32[32,128], index: 7, kind: input, shape index: {}]   ;;  %s3051_s8 = inlined_call_operand.vmem [shape: f32[64,32], index: 8, kind: input, shape index: {}]   ;;  %s3052_s9 = inlined_call_operand.hbm [shape: f32[2,8,32], index: 9, kind: output, shape index: {}]  }
   0x1   :  { %3064 = sst [smem:[#allocation18_spill]] %s3044_s1 }
   0x2   :  { %14 = vsyncpa [#allocation3], 0 }
   0x3   :  { %16 = vsyncpa [#allocation3 + $0x1], 0 }
   0x4   :  { %17 = vsyncpa [#allocation6], 0 }
   0x5   :  { %19 = vsyncpa [#allocation6 + $0x1], 0 }
   0x6   :  { %20 = vsyncpa [#allocation4], 0 }
   0x7   :  { %22 = vsyncpa [#allocation4 + $0x1], 0  ;;  %s2542_s30 = smov 0   ;;  %s2544_s10 = smov 0  }
   0x8   :  { %s2546_s11 = smov 0   ;;  %s2548_s12 = smov 0  }
   0x9 LB: > { %3065 = sst [smem:[#allocation12_spill]] %s2447_s30  ;;  %s2563_s13 = sadd.s32 4294967295, %s2459_s12   ;;  %s2459_s12 = sphi %s2548_s12, %s3090_s12   ;;  %s2455_s11 = sphi %s2546_s11, %s3092_s11   ;;  %s2451_s10 = sphi %s2544_s10, %s3094_s10   ;;  %s2447_s30 = sphi %s2542_s30, %s3093_s30  }
   0xa   : > { %3066 = sst [smem:[#allocation13_spill]] %s2455_s11  ;;  %s1976_s14 = sadd.s32 4294967294, %s2459_s12  }
   0xb   : > { %3067 = sst [smem:[#allocation14_spill]] %s2459_s12  ;;  %s2567_s15 = sadd.s32 1, %s2459_s12  }
   0xc   : > { %3068 = sst [smem:[#allocation15_spill]] %s2567_s15  ;;  %s35_s16 = sadd.s32 1, %s2455_s11 }
   0xd   : > { %s32_s17 = ssub.s32 %s2459_s12, %s2567_s15  ;;  %p42_p0 = scmp.ne.s32.totalorder %s2455_s11, %s2451_s10 }
   0xe   : > { %p33_p1 = scmp.eq.s32.totalorder %s32_s17, 0  ;;  %p43_p2 = scmp.eq.s32.totalorder %s2459_s12, 0 }
   0xf   : > { %p48_p3 = scmp.ne.s32.totalorder %s2451_s10, %s2447_s30  ;;  %p49_p4 = scmp.eq.s32.totalorder %s2563_s13, 0 }
  0x10   : > { %s2579_s18 = scalar_select %p33_p1, %s2455_s11, %s35_s16  }
  0x11   : > { %p44_p5 = por %p43_p2, %p42_p0  ;;  %p2581_p6 = por %p49_p4, %p48_p3 }
  0x12   : > { %3069 = sst [smem:[#allocation16_spill]] %s2579_s18  ;;  %p250_p7 = scmp.eq.s32.totalorder %s2563_s13, 1 }
  0x13   : > { %s3070_s19 = scalar_select %p2581_p6, 1, 0 }
  0x14   : > { %p256_p8 = scmp.eq.s32.totalorder %s1976_s14, 1  ;;  %p2206_p10 = scmp.lt.s32.totalorder %s2459_s12, 2 }
  0x15   : > { %p2588_p11 = por %p250_p7, %p42_p0  ;;  %s3053_s22 = sand.u32 1, %s2455_s11  }
  0x16   : > { %p2592_p12 = por %p256_p8, %p48_p3  ;;  %s2598_s23 = sshll.u32 %s2459_s12, 7 }
  0x17   : > { %s3071_s20 = scalar_select %p2588_p11, 1, 0 }
  0x18   : > { %s3072_s21 = scalar_select %p2592_p12, 1, 0 }
  0x19   : > { %s2602_s24 = sshll.u32 %s3053_s22, 3  ;;  %p2604_p13 = pnand %p2206_p10, %p44_p5 }
  0x1a   : > { %3073 = sst [smem:[#allocation17_spill]] %s3072_s21  ;;  %s312_s26 = sand.u32 1, %s2459_s12  }
  0x1b   : > { %s3074_s25 = scalar_select %p2604_p13, 1, 0 }
  0x1c   : > { %s3075_s1 = sld [smem:[#allocation18_spill]]  ;;  %s316_s14 = scalar_lea.vmem [#allocation5], %s2602_s24 }
  0x1d   : > { %s323_s16 = sshll.u32 %s316_s14, 4  ;;  %s2619_s17 = scalar_lea.sflag [#allocation6], %s312_s26  ;;  %s2616_s16 = int_to_ptr.vmem [resolvable:$true] %s323_s16 }
  0x1e   : > { %p2625_p2 = pneg %p2604_p13 }
  0x22   : > { %s2613_s29 = scalar_lea.hbm %s3075_s1, %s2598_s23  ;;  %s2304_s14 = scalar_lea.hbm %s3075_s1, 256 }
  0x23   : > { %s2299_s22 = scalar_lea.hbm %s2613_s29, 128  ;;  %p2305_p5 = scmp.lt.u32.totalorder %s2613_s29, %s3075_s1 }
  0x24   : > { %p2300_p1 = scmp.ne.s32.totalorder %s2613_s29, %s2299_s22  ;;  %p2306_p7 = scmp.lt.u32.totalorder %s2304_s14, %s2299_s22 }
  0x25   : > { %p2308_p10 = scmp.lt.u32.totalorder %s2299_s22, %s2613_s29 }
  0x26   : > { %p2302_p3 = pnand %p2625_p2, %p2300_p1  ;;  %p2307_p8 = por %p2306_p7, %p2305_p5 }
  0x28   : > { %p2303_p4 = pneg %p2302_p3  ;;  %p2309_p9 = por %p2308_p10, %p2307_p8 }
  0x2a   : > { %p2310_p0 = pnand %p2309_p9, %p2303_p4 }
  0x2c   : > { %2313 = shalt.err (!%p2310_p0)
}
  0x2d   : > { %s2314_s26 = scalar_lea.vmem %s2616_s16, 128  ;;  %s2461_s27 = smov [#allocation5]  }
  0x2e   : > { %p2315_p1 = scmp.ne.s32.totalorder %s2616_s16, %s2314_s26  ;;  %s2319_s28 = sshll.u32 %s2461_s27, 4  ;;  %s2320_s28 = int_to_ptr.vmem [resolvable:$false] %s2319_s28 }
  0x2f   : > { %s2321_s15 = scalar_lea.vmem %s2320_s28, 256  ;;  %p2322_p11 = scmp.lt.s32.totalorder %s2616_s16, %s2320_s28 }
  0x30   : > { %p2317_p3 = pnand %p2315_p1, %p2625_p2  ;;  %p2323_p6 = scmp.lt.s32.totalorder %s2321_s15, %s2314_s26 }
  0x32   : > { %p2318_p12 = pneg %p2317_p3  ;;  %p2324_p5 = por %p2323_p6, %p2322_p11 }
  0x34   : > { %p2325_p7 = pnand %p2324_p5, %p2318_p12 }
  0x36   : > { %2328 = shalt.err (!%p2325_p7)
}
  0x37   : > { %2198 = dma.hbm_to_vmem [thread:$0]  (!%p2604_p13), %s2613_s29, 128, %s2616_s16, %s2619_s17  }
  0x38   : > { %p346_p9 = scmp.lt.s32.totalorder %s2459_s12, 3  ;;  %s2654_s14 = scalar_lea.hbm %s3043_s0, %s2598_s23 }
  0x39   : > { %p3077_p6 = scmp.ge.s32.totalorder %s2459_s12, 1  ;;  %s298_s27 = scalar_lea.vmem [#allocation2], %s2602_s24 }
  0x3a   : > { %s305_s28 = sshll.u32 %s298_s27, 4  ;;  %s3079_s15 = sand.u32 1, %s2455_s11   ;;  %s306_s28 = int_to_ptr.vmem [resolvable:$true] %s305_s28 }
  0x3b   : > { %p2658_p11 = pnand %p3077_p6, %p346_p9  ;;  %s295_s29 = scalar_lea.sflag [#allocation3], %s3079_s15 }
  0x3c   : > { %s2329_s16 = scalar_lea.hbm %s2654_s14, 128  ;;  %s2334_s1 = scalar_lea.hbm %s3043_s0, 256 }
  0x3d   : > { %s3078_s26 = scalar_select %p2658_p11, 1, 0 }
  0x3e   : > { %p2330_p12 = scmp.ne.s32.totalorder %s2654_s14, %s2329_s16  ;;  %p2335_p8 = scmp.lt.u32.totalorder %s2654_s14, %s3043_s0 }
  0x3f   : > { %p2336_p10 = scmp.lt.u32.totalorder %s2334_s1, %s2329_s16  ;;  %p2338_p3 = scmp.lt.u32.totalorder %s2329_s16, %s2654_s14 }
  0x40   : > { %p2332_p0 = pnand %p2330_p12, %p2625_p2 }
  0x41   : > { %p2337_p1 = por %p2336_p10, %p2335_p8 }
  0x42   : > { %p2333_p4 = pneg %p2332_p0 }
  0x43   : > { %p2339_p5 = por %p2338_p3, %p2337_p1 }
  0x45   : > { %p2340_p7 = pnand %p2339_p5, %p2333_p4 }
  0x47   : > { %2343 = shalt.err (!%p2340_p7)
}
  0x48   : > { %s2344_s27 = scalar_lea.vmem %s306_s28, 128  ;;  %s2462_s15 = smov [#allocation2]  }
  0x49   : > { %p2345_p9 = scmp.ne.s32.totalorder %s306_s28, %s2344_s27  ;;  %s2349_s11 = sshll.u32 %s2462_s15, 4  ;;  %s2350_s11 = int_to_ptr.vmem [resolvable:$false] %s2349_s11 }
  0x4a   : > { %s2351_s21 = scalar_lea.vmem %s2350_s11, 256  ;;  %p2352_p0 = scmp.lt.s32.totalorder %s306_s28, %s2350_s11 }
  0x4b   : > { %p2347_p6 = pnand %p2345_p9, %p2625_p2  ;;  %p2353_p11 = scmp.lt.s32.totalorder %s2351_s21, %s2344_s27 }
  0x4d   : > { %p2348_p12 = pneg %p2347_p6  ;;  %p2354_p13 = por %p2353_p11, %p2352_p0 }
  0x4f   : > { %p2355_p8 = pnand %p2354_p13, %p2348_p12 }
  0x51   : > { %2358 = shalt.err (!%p2355_p8)
}
  0x52   : > { %p3080_p10 = scmp.ne.s32.totalorder %s3074_s25, 0  ;;  %s2686_s12 = scalar_lea.hbm %s3045_s2, %s2598_s23 }
  0x53   : > { %s334_s11 = scalar_lea.vmem [#allocation7], %s2602_s24  ;;  %s2359_s22 = scalar_lea.hbm %s2686_s12, 128 }
  0x54   : > { %2195 = dma.hbm_to_vmem [thread:$0]  (!%p3080_p10), %s2654_s14, 128, %s306_s28, %s295_s29  }
  0x55   : > { %s341_s16 = sshll.u32 %s334_s11, 4  ;;  %p2360_p13 = scmp.ne.s32.totalorder %s2686_s12, %s2359_s22  ;;  %s342_s16 = int_to_ptr.vmem [resolvable:$true] %s341_s16 }
  0x56   : > { %s2364_s14 = scalar_lea.hbm %s3045_s2, 256  ;;  %p2365_p1 = scmp.lt.u32.totalorder %s2686_s12, %s3045_s2 }
  0x57   : > { %p2362_p11 = pnand %p2360_p13, %p2625_p2  ;;  %p2366_p3 = scmp.lt.u32.totalorder %s2364_s14, %s2359_s22 }
  0x58   : > { %p2368_p7 = scmp.lt.u32.totalorder %s2359_s22, %s2686_s12 }
  0x59   : > { %p2363_p4 = pneg %p2362_p11  ;;  %p2367_p5 = por %p2366_p3, %p2365_p1 }
  0x5b   : > { %p2369_p9 = por %p2368_p7, %p2367_p5 }
  0x5d   : > { %p2370_p6 = pnand %p2369_p9, %p2363_p4 }
  0x5f   : > { %2373 = shalt.err (!%p2370_p6)
}
  0x60   : > { %s2374_s23 = scalar_lea.vmem %s342_s16, 128  ;;  %s2463_s24 = smov [#allocation7]  }
  0x61   : > { %p2375_p12 = scmp.ne.s32.totalorder %s342_s16, %s2374_s23  ;;  %s2379_s21 = sshll.u32 %s2463_s24, 4  ;;  %s2380_s21 = int_to_ptr.vmem [resolvable:$false] %s2379_s21 }
  0x62   : > { %s2381_s1 = scalar_lea.vmem %s2380_s21, 256  ;;  %p2382_p13 = scmp.lt.s32.totalorder %s342_s16, %s2380_s21 }
  0x63   : > { %p2377_p0 = pnand %p2375_p12, %p2625_p2  ;;  %p2383_p11 = scmp.lt.s32.totalorder %s2381_s1, %s2374_s23 }
  0x65   : > { %p2378_p8 = pneg %p2377_p0  ;;  %p2384_p10 = por %p2383_p11, %p2382_p13 }
  0x67   : > { %p2385_p1 = pnand %p2384_p10, %p2378_p8 }
  0x69   : > { %2388 = shalt.err (!%p2385_p1)
}
  0x6a   : > { %p3081_p3 = scmp.ne.s32.totalorder %s3074_s25, 0  ;;  %p3082_p4 = scmp.ne.s32.totalorder %s3078_s26, 0 }
  0x6b   : > { %s2710_s18 = sand.u32 (!%p3082_p4), 1, %s2451_s10   ;;  %p3083_p2 = scmp.ne.s32.totalorder (!%p3082_p4), %s3070_s19, 0 }
  0x6c   : > { %2201 = dma.hbm_to_vmem [thread:$0]  (!%p3081_p3), %s2686_s12, 128, %s342_s16, %s2619_s17  }
  0x6d   : > { %350 = sbr.rel (%p3082_p4) target bundleno = 3484 (0xd9c), region = 56  ;;  %s2713_s30 = sshll.u32 (!%p3082_p4), %s2710_s18, 3 }
  0x6e   : > { %s353_s11 = scalar_lea.sflag (!%p3082_p4), [#allocation3], %s2710_s18  ;;  %s356_s22 = scalar_lea.vmem (!%p3082_p4), [#allocation2], %s2713_s30 }
  0x74   : > { %2434 = dma.done.wait (%p3083_p2), %s353_s11, 128  }
  0x75   : > { %2436 = vsyncadd (%p3083_p2), %s353_s11, 4294967168  ;;  %s361_s25 = sand.u32 1, %s2563_s13   ;;  %s365_s26 = scalar_lea.vmem [#allocation5], %s2713_s30 }
  0x76   : > { %s362_s17 = scalar_lea.sflag [#allocation6], %s361_s25 }
  0x77   : > { %2438 = dma.done.wait (%p3083_p2), %s362_s17, 256  }
  0x78   : > { %2440 = vsyncadd (%p3083_p2), %s362_s17, 4294967040  ;;  %v2727_v0 = vld [vmem:[%s356_s22] sm:$0xff]  ;;  %vm421_vm0 = vcmask 261120   ;;  %v440_v5 = vld [vmem:[%s3047_s4 + $0x10] sm:$0xff]  ;;  %v2464_v6 = vmov 0.0|0.0   ;;  %vm2465_vm1 = vmmov 0   ;;  %v518_v58 = vlaneseq }
  0x79   : > { %v420_v1 = vmul.f32 %v2727_v0, %v2727_v0  ;;  %v438_v3 = vld [vmem:[%s3047_s4] sm:$0xff]  ;;  %v439_v4 = vld [vmem:[%s3047_s4 + $0x8] sm:$0xff]  ;;  %2160 = vmatprep.subr.bf16.mxu0 %v2464_v6  ;;  %v441_v8 = vld [vmem:[%s3047_s4 + $0x18] sm:$0xff]  ;;  %v2466_v9 = vmov 0.0   ;;  %s2467_s21 = smov 100   ;;  %s2468_s1 = smov 92  }
  0x7a   : > { %v2161_v7 = vpack.c.bf16 %v439_v4, %v438_v3  ;;  %2067 = vmatprep.mubr.msk.f32.mxu0 %vm2465_vm1, %v2466_v9  ;;  %2075 = vmatprep.subr.mxu1 %v2466_v9  ;;  %v2164_v10 = vpack.c.bf16 %v441_v8, %v440_v5  ;;  %v1990_v15 = vld [vmem:[%s3046_s3] ss:$0 sm:$0xff]  ;;  %v2770_v21 = vld [vmem:[%s365_s26] sm:$0xff]  ;;  %s2469_s11 = smov 40   ;;  %s2470_s22 = smov 84   ;;  %vm529_vm2 = vcmask 31744  }
  0x7b   : > { %v422_v2 = vsel %vm421_vm0, %v420_v1, 0.0  ;;  %2077 = vmatprep.mubr.msk.f32.mxu1 %vm2465_vm1, %v2466_v9  ;;  %s2471_s25 = smov 8   ;;  %s2472_s17 = smov 116   ;;  %vm558_vm3 = vcmask 64512   ;;  %v2816_v59 = vshrl.u32 %v518_v58, 7  ;;  %v2818_v60 = vand.u32 127, %v518_v58 }
  0x7c   : > { %423 = vadd.xlane.f32.xlu0 %v422_v2  ;;  %2162 = vmatpush3.bf16.msra.mxu0 %v2161_v7  ;;  %s2473_s26 = smov 124   ;;  %s2474_s12 = smov 32   ;;  %vm1774_vm5 = vcmask 523264  }
  0x7d   : > { %2163 = vmatprep.subr.bf16.mxu0 %v2464_v6  ;;  %s374_s16 = scalar_lea.vmem [#allocation7], %s2713_s30  ;;  %s2475_s27 = smov 4   ;;  %vm636_vm4 = vcmp.le.s32.totalorder %v2818_v60, %v2816_v59 }
  0x7e   : > { %v2789_v25 = vld [vmem:[%s374_s16] sm:$0xff]  ;;  %s2476_s15 = smov 96   ;;  %s2477_s14 = smov 88  }
  0x7f   : > { %s2478_s19 = smov 120   ;;  %s2479_s28 = smov 56  }
  0x80   : > { %2165 = vmatpush3.bf16.msra.mxu0 %v2164_v10  ;;  %s2480_s29 = smov 76   ;;  %s2481_s23 = smov 108  }
  0x81   : > { %2070 = vmatprep.subr.mxu0 %v2466_v9  ;;  %s2482_s24 = smov 48   ;;  %s2487_s16 = smov 68  }
  0x82   : > { %p3084_p5 = scmp.ne.s32.totalorder %s3071_s20, 0 }
 0x109   : > { %v424_v11 = vpop.xlane.xlu0 %423 }
 0x10a   : > { %v426_v12 = vmul.f32 0.03125, %v424_v11 }
 0x10c   : > { %v427_v13 = vadd.f32 1e-06, %v426_v12 }
 0x10e   : > { %2267 = vrsqrt.f32 %v427_v13 }
 0x118   : > { %v2268_v14 = vpop.eup %2267 }
 0x119   : > { %v429_v16 = vmul.f32 %v2268_v14, %v2727_v0 }
 0x11b   : > { %v437_v17 = vmul.f32 %v1990_v15, %v429_v16 }
 0x11d   : > { %2068 = vmatmul.mubr.msk.f32.vlgmr.msra.gmra.mrb[0].mxu0 %vm421_vm0, %v437_v17 }
 0x11e   : > { %2072 = vmatprep.mubr.msk.f32.mxu0 %vm2465_vm1, %v2466_v9 }
 0x1f0   : > { %v2759_v18 = vpop.f32.mrb[0].mxu0 }
 0x1f1   : > { %540 = vrot.lane.b32.xlu1 %v2759_v18, %s2467_s21  ;;  %v2069_v19 = vpop.f32.mrb[1].mxu0  ;;  %v2764_v20 = vsub.f32 0.0, %v2759_v18  ;;  %v2775_v22 = vmul.f32 0.35355338, %v2759_v18 }
 0x1f3   : > { %536 = vrot.lane.b32.xlu0 %v2764_v20, %s2468_s1  ;;  %v2781_v23 = vsub.f32 0.0, %v2775_v22  ;;  %v531_v53 = vmul.f32 %v2770_v21, %v2775_v22 }
 0x1f5   : > { %753 = vrot.lane.b32.xlu1 %v2759_v18, %s2468_s1  ;;  %s2483_s1 = smov 64  }
 0x1f7   : > { %757 = vrot.lane.b32.xlu0 %v2770_v21, %s2469_s11 }
 0x1f9   : > { %750 = vrot.lane.b32.xlu1 %v2764_v20, %s2470_s22 }
 0x1fb   : > { %740 = vrot.lane.b32.xlu0 %v2770_v21, %s2471_s25 }
 0x1fd   : > { %733 = vrot.lane.b32.xlu1 %v2781_v23, %s2472_s17 }
 0x1ff   : > { %522 = vrot.lane.b32.xlu0 %v2781_v23, %s2473_s26 }
 0x201   : > { %736 = vrot.lane.b32.xlu1 %v2775_v22, %s2473_s26  ;;  %s2485_s26 = smov 80  }
 0x205   : > { %545 = vrot.lane.b32.xlu1 %v2770_v21, %s2474_s12 }
 0x263   : > { %v541_v24 = vpop.permute.xlu1 %540 }
 0x265   : > { %v537_v26 = vpop.permute.xlu0 %536 }
 0x266   : > { %v543_v27 = vsel %vm529_vm2, %v537_v26, %v541_v24 }
 0x267   : > { %v549_v28 = vmul.f32 %v543_v27, %v2789_v25  ;;  %v754_v29 = vpop.permute.xlu1 %753 }
 0x269   : > { %551 = vrot.lane.b32.xlu1 %v549_v28, %s2474_s12  ;;  %v758_v41 = vpop.permute.xlu0 %757  ;;  %s2486_s12 = smov 112  }
 0x26a   : > { %v760_v42 = vmul.f32 %v758_v41, %v2759_v18 }
 0x26b   : > { %v751_v30 = vpop.permute.xlu1 %750 }
 0x26c   : > { %v756_v31 = vsel %vm529_vm2, %v751_v30, %v754_v29 }
 0x26d   : > { %v761_v32 = vmul.f32 %v756_v31, %v2789_v25  ;;  %v741_v45 = vpop.permute.xlu0 %740 }
 0x26e   : > { %v743_v46 = vmul.f32 %v741_v45, %v2775_v22 }
 0x26f   : > { %763 = vrot.lane.b32.xlu1 %v761_v32, %s2469_s11  ;;  %v734_v33 = vpop.permute.xlu1 %733 }
 0x271   : > { %v523_v50 = vpop.permute.xlu0 %522 }
 0x273   : > { %v737_v34 = vpop.permute.xlu1 %736 }
 0x274   : > { %v739_v35 = vsel %vm529_vm2, %v734_v33, %v737_v34 }
 0x275   : > { %v744_v36 = vmul.f32 %v739_v35, %v2789_v25  ;;  %v942_v35 = vld [vmem:[%s3048_s5 + $0x8] sm:$0xff] }
 0x277   : > { %746 = vrot.lane.b32.xlu1 %v744_v36, %s2471_s25  ;;  %v546_v37 = vpop.permute.xlu1 %545  ;;  %s2484_s25 = smov 16  }
 0x278   : > { %v548_v38 = vmul.f32 %v546_v37, %v2759_v18 }
 0x27b   : > { %526 = vrot.lane.b32.xlu1 %v2775_v22, %s2475_s27 }
 0x2db   : > { %v552_v39 = vpop.permute.xlu1 %551 }
 0x2dc   : > { %v554_v40 = vadd.f32 %v552_v39, %v548_v38 }
 0x2de   : > { %556 = vrot.lane.b32.xlu0 %v554_v40, %s2476_s15 }
 0x2e1   : > { %v764_v43 = vpop.permute.xlu1 %763 }
 0x2e2   : > { %v766_v44 = vadd.f32 %v764_v43, %v760_v42 }
 0x2e4   : > { %771 = vrot.lane.b32.xlu1 %v766_v44, %s2477_s14  ;;  %s2489_s14 = smov 104  }
 0x2e9   : > { %v747_v47 = vpop.permute.xlu1 %746 }
 0x2ea   : > { %v749_v48 = vadd.f32 %v747_v47, %v743_v46 }
 0x2ec   : > { %768 = vrot.lane.b32.xlu0 %v749_v48, %s2478_s19  ;;  %s2490_s19 = smov 72  }
 0x2ed   : > { %v527_v49 = vpop.permute.xlu1 %526 }
 0x2ee   : > { %v530_v51 = vsel %vm529_vm2, %v523_v50, %v527_v49 }
 0x2ef   : > { %v532_v52 = vmul.f32 %v530_v51, %v2789_v25 }
 0x2f1   : > { %v533_v55 = vadd.f32 %v532_v52, %v531_v53 }
 0x350   : > { %v557_v54 = vpop.permute.xlu0 %556 }
 0x351   : > { %2071 = vmatpush3.xpose.msk.msra.mxu0 %vm558_vm3, %v557_v54 }
 0x352   : > { %2080 = vmatprep.subr.mxu0 %v2466_v9 }
 0x354   : > { %2073 = vmatmul.mubr.msk.f32.vlgmr.msra.gmra.mrb[2].mxu0 %vm558_vm3, %v533_v55 }
 0x355   : > { %2082 = vmatprep.mubr.msk.f32.mxu0 %vm2465_vm1, %v2466_v9 }
 0x356   : > { %v772_v56 = vpop.permute.xlu1 %771 }
 0x357   : > { %2081 = vmatpush3.xpose.msk.msra.mxu0 %vm558_vm3, %v772_v56 }
 0x358   : > { %2090 = vmatprep.subr.mxu0 %v2466_v9 }
 0x35e   : > { %v769_v57 = vpop.permute.xlu0 %768 }
 0x35f   : > { %2083 = vmatmul.mubr.msk.f32.vlgmr.msra.gmra.mrb[4].mxu0 %vm558_vm3, %v769_v57 }
 0x360   : > { %2092 = vmatprep.mubr.msk.f32.mxu0 %vm2465_vm1, %v2466_v9  ;;  %2091 = vmatpush3.msra.mxu0 %v942_v35 }
 0x361   : > { %2100 = vmatprep.subr.mxu0 %v2466_v9 }
 0x427   : > { %v630_v61 = vpop.f32.mrb[2].mxu0 }
 0x428   : > { %v637_v62 = vsel %vm636_vm4, %v630_v61, -1e+30  ;;  %v2074_v63 = vpop.f32.mrb[3].mxu0 }
 0x429   : > { %v638_v1 = vsel %vm558_vm3, %v637_v62, -inf }
 0x42a   : > { %639 = vmax.xlane.f32.xlu1 %v638_v1 }
 0x432   : > { %v843_v2 = vpop.f32.mrb[4].mxu0 }
 0x433   : > { %v847_v3 = vsel %vm636_vm4, %v843_v2, -1e+30  ;;  %v2084_v4 = vpop.f32.mrb[5].mxu0 }
 0x434   : > { %v848_v5 = vsel %vm558_vm3, %v847_v3, -inf }
 0x435   : > { %849 = vmax.xlane.f32.xlu0 %v848_v5 }
 0x43b   : > { %863 = vrot.lane.b32.xlu1 %v2759_v18, %s2479_s28 }
 0x43f   : > { %1106 = vrot.lane.b32.xlu1 %v2764_v20, %s2480_s29 }
 0x443   : > { %1089 = vrot.lane.b32.xlu1 %v2781_v23, %s2481_s23 }
 0x447   : > { %1113 = vrot.lane.b32.xlu1 %v2770_v21, %s2482_s24 }
 0x44b   : > { %653 = vrot.lane.b32.xlu0 %v2759_v18, %s2483_s1  ;;  %1096 = vrot.lane.b32.xlu1 %v2770_v21, %s2484_s25 }
 0x44f   : > { %1109 = vrot.lane.b32.xlu0 %v2759_v18, %s2470_s22 }
 0x453   : > { %1092 = vrot.lane.b32.xlu0 %v2775_v22, %s2472_s17 }
 0x4b7   : > { %v640_v7 = vpop.xlane.xlu1 %639 }
 0x4b8   : > { %v641_v8 = vmax.f32 %v640_v7, -1e+30 }
 0x4ba   : > { %v645_v10 = vsub.f32 %v637_v62, %v641_v8  ;;  %v642_v45 = vsub.f32 -1e+30, %v641_v8 }
 0x4bb   : > { %v864_v12 = vpop.permute.xlu1 %863 }
 0x4bc   : > { %v646_v11 = vmul.f32 1.442695, %v645_v10  ;;  %v643_v47 = vmul.f32 1.442695, %v642_v45 }
 0x4be   : > { %2269 = vpow2.f32 %v646_v11 }
 0x4bf   : > { %v1107_v19 = vpop.permute.xlu1 %1106 }
 0x4c2   : > { %v850_v13 = vpop.xlane.xlu0 %849 }
 0x4c3   : > { %v851_v14 = vmax.f32 %v850_v13, -1e+30  ;;  %v1090_v29 = vpop.permute.xlu1 %1089 }
 0x4c5   : > { %v855_v15 = vsub.f32 %v847_v3, %v851_v14  ;;  %v852_v44 = vsub.f32 -1e+30, %v851_v14 }
 0x4c6   : > { %v654_v16 = vpop.permute.xlu0 %653 }
 0x4c7   : > { %v856_v17 = vmul.f32 1.442695, %v855_v15  ;;  %2076 = vmatpush3.msra.mxu1 %v654_v16  ;;  %v1114_v36 = vpop.permute.xlu1 %1113  ;;  %v853_v46 = vmul.f32 1.442695, %v852_v44 }
 0x4c8   : > { %2085 = vmatprep.subr.mxu1 %v2466_v9  ;;  %v2847_v24 = vpop.eup %2269  ;;  %v1116_v37 = vmul.f32 %v1114_v36, %v2759_v18 }
 0x4c9   : > { %2271 = vpow2.f32 %v856_v17  ;;  %2078 = vmatmul.mubr.msk.f32.vlgmr.msra.gmra.mrb[0].mxu1 %vm558_vm3, %v2847_v24  ;;  %v649_v11 = vsel %vm558_vm3, %v2847_v24, 0.0 }
 0x4ca   : > { %v1110_v26 = vpop.permute.xlu0 %1109  ;;  %2086 = vmatpush3.msra.mxu1 %v864_v12  ;;  %2087 = vmatprep.mubr.msk.f32.mxu1 %vm2465_vm1, %v2466_v9  ;;  %2273 = vpow2.f32 %v853_v46  ;;  %v732_v12 = vld [vmem:[%s3048_s5] sm:$0xff]  ;;  %v1298_v46 = vld [vmem:[%s3048_s5 + $0x10] sm:$0xff] }
 0x4cb   : > { %v1112_v27 = vsel %vm529_vm2, %v1107_v19, %v1110_v26  ;;  %2095 = vmatprep.subr.mxu1 %v2466_v9  ;;  %v1097_v38 = vpop.permute.xlu1 %1096  ;;  %2275 = vpow2.f32 %v643_v47 }
 0x4cc   : > { %v1117_v28 = vmul.f32 %v1112_v27, %v2789_v25  ;;  %v1099_v41 = vmul.f32 %v1097_v38, %v2775_v22 }
 0x4ce   : > { %1119 = vrot.lane.b32.xlu0 %v1117_v28, %s2482_s24  ;;  %v1093_v30 = vpop.permute.xlu0 %1092 }
 0x4cf   : > { %v1095_v31 = vsel %vm529_vm2, %v1090_v29, %v1093_v30 }
 0x4d0   : > { %v1100_v32 = vmul.f32 %v1095_v31, %v2789_v25 }
 0x4d2   : > { %1102 = vrot.lane.b32.xlu0 %v1100_v32, %s2484_s25 }
 0x4d3   : > { %v2272_v33 = vpop.eup %2271 }
 0x4d4   : > { %2088 = vmatmul.mubr.msk.f32.vlgmr.msra.gmra.mrb[2].mxu1 %vm558_vm3, %v2272_v33  ;;  %v859_v34 = vsel %vm558_vm3, %v2272_v33, 0.0  ;;  %v2274_v48 = vpop.eup %2273 }
 0x4d5   : > { %860 = vadd.xlane.f32.xlu1 %v859_v34  ;;  %2097 = vmatprep.mubr.msk.f32.mxu1 %vm2465_vm1, %v2466_v9  ;;  %v858_v50 = vmul.f32 0.0, %v2274_v48 }
 0x4d6   : > { %2096 = vmatpush3.msra.mxu1 %v732_v12 }
 0x4d7   : > { %2105 = vmatprep.subr.mxu1 %v2466_v9 }
 0x540   : > { %v1120_v39 = vpop.permute.xlu0 %1119 }
 0x541   : > { %v1122_v40 = vadd.f32 %v1120_v39, %v1116_v37 }
 0x543   : > { %1127 = vrot.lane.b32.xlu0 %v1122_v40, %s2485_s26 }
 0x544   : > { %v1103_v42 = vpop.permute.xlu0 %1102 }
 0x545   : > { %v1105_v43 = vadd.f32 %v1103_v42, %v1099_v41 }
 0x547   : > { %1124 = vrot.lane.b32.xlu0 %v1105_v43, %s2486_s12 }
 0x54b   : > { %1390 = vrot.lane.b32.xlu0 %v2764_v20, %s2487_s16  ;;  %v2276_v20 = vpop.eup %2275 }
 0x54c   : > { %v648_v52 = vmul.f32 0.0, %v2276_v20 }
 0x54f   : > { %1393 = vrot.lane.b32.xlu0 %v2759_v18, %s2480_s29 }
 0x553   : > { %1373 = vrot.lane.b32.xlu0 %v2781_v23, %s2467_s21  ;;  %s2488_s21 = smov 24  }
 0x557   : > { %1376 = vrot.lane.b32.xlu0 %v2775_v22, %s2481_s23 }
 0x55b   : > { %1397 = vrot.lane.b32.xlu0 %v2770_v21, %s2479_s28 }
 0x562   : > { %v861_v49 = vpop.xlane.xlu1 %860 }
 0x563   : > { %v862_v51 = vadd.f32 %v861_v49, %v858_v50 }
 0x565   : > { %2277 = vrcp.f32 %v862_v51 }
 0x56f   : > { %v2278_v58 = vpop.eup %2277 }
 0x59c   : > { %v725_v53 = vpop.f32.mrb[0].mxu1 }
 0x59d   : > { %v729_v23 = vadd.f32 %v725_v53, %v648_v52  ;;  %v2079_v54 = vpop.f32.mrb[1].mxu1 }
 0x5a7   : > { %v935_v55 = vpop.f32.mrb[2].mxu1 }
 0x5a8   : > { %v939_v56 = vadd.f32 %v935_v55, %v858_v50  ;;  %v2089_v57 = vpop.f32.mrb[3].mxu1 }
 0x5aa   : > { %v941_v61 = vmul.f32 %v2278_v58, %v939_v56 }
 0x5ac   : > { %2093 = vmatmul.mubr.msk.f32.vlgmr.msra.gmra.mrb[6].mxu0 %vm558_vm3, %v941_v61 }
 0x5ad   : > { %2102 = vmatprep.mubr.msk.f32.mxu0 %vm2465_vm1, %v2466_v9 }
 0x5b5   : > { %v1128_v62 = vpop.permute.xlu0 %1127 }
 0x5b6   : > { %2101 = vmatpush3.xpose.msk.msra.mxu0 %vm558_vm3, %v1128_v62 }
 0x5b7   : > { %2110 = vmatprep.subr.mxu0 %v2466_v9 }
 0x5b9   : > { %v1125_v63 = vpop.permute.xlu0 %1124 }
 0x5ba   : > { %2103 = vmatmul.mubr.msk.f32.vlgmr.msra.gmra.mrb[8].mxu0 %vm558_vm3, %v1125_v63 }
 0x5bb   : > { %2112 = vmatprep.mubr.msk.f32.mxu0 %vm2465_vm1, %v2466_v9  ;;  %2111 = vmatpush3.msra.mxu0 %v1298_v46  ;;  %v1767_v46 = vld [vmem:[%s3051_s8 + $0x20] sm:$0xff] }
 0x5bc   : > { %2120 = vmatprep.subr.mxu0 %v2466_v9 }
 0x5bd   : > { %v1391_v1 = vpop.permute.xlu0 %1390 }
 0x5c1   : > { %v1394_v2 = vpop.permute.xlu0 %1393 }
 0x5c2   : > { %v1396_v3 = vsel %vm529_vm2, %v1391_v1, %v1394_v2 }
 0x5c3   : > { %v1401_v4 = vmul.f32 %v1396_v3, %v2789_v25 }
 0x5c5   : > { %1403 = vrot.lane.b32.xlu0 %v1401_v4, %s2479_s28  ;;  %v1374_v5 = vpop.permute.xlu0 %1373 }
 0x5c9   : > { %1380 = vrot.lane.b32.xlu0 %v2770_v21, %s2488_s21  ;;  %v1377_v7 = vpop.permute.xlu0 %1376 }
 0x5ca   : > { %v1379_v8 = vsel %vm529_vm2, %v1374_v5, %v1377_v7  ;;  %v1582_v7 = vld [vmem:[%s3048_s5 + $0x18] sm:$0xff] }
 0x5cb   : > { %v1384_v10 = vmul.f32 %v1379_v8, %v2789_v25 }
 0x5cd   : > { %1386 = vrot.lane.b32.xlu1 %v1384_v10, %s2488_s21  ;;  %v1398_v21 = vpop.permute.xlu0 %1397 }
 0x5ce   : > { %v1400_v13 = vmul.f32 %v1398_v21, %v2759_v18 }
 0x5e8   : > { %650 = vadd.xlane.f32.xlu0 %v649_v11 }
 0x5fe   : > { %1219 = vrot.lane.b32.xlu0 %v2759_v18, %s2482_s24 }
 0x637   : > { %v1404_v14 = vpop.permute.xlu0 %1403 }
 0x638   : > { %v1406_v25 = vadd.f32 %v1404_v14, %v1400_v13 }
 0x63b   : > { %v1381_v15 = vpop.permute.xlu0 %1380 }
 0x63c   : > { %v1383_v16 = vmul.f32 %v1381_v15, %v2775_v22 }
 0x63f   : > { %v1387_v17 = vpop.permute.xlu1 %1386 }
 0x640   : > { %v1389_v19 = vadd.f32 %v1387_v17, %v1383_v16 }
 0x642   : > { %1408 = vrot.lane.b32.xlu0 %v1389_v19, %s2489_s14  ;;  %s2013_s14 = sshll.u32 %s2563_s13, 7  ;;  %s2491_s13 = smov [#allocation8]  }
 0x643   : > { %s2998_s23 = scalar_lea.hbm %s3052_s9, %s2013_s14 }
 0x675   : > { %v651_v24 = vpop.xlane.xlu0 %650 }
 0x676   : > { %v652_v26 = vadd.f32 %v651_v24, %v648_v52 }
 0x678   : > { %2279 = vrcp.f32 %v652_v26 }
 0x679   : > { %v1220_v31 = vpop.permute.xlu0 %1219 }
 0x67f   : > { %v1012_v27 = vpop.f32.mrb[6].mxu0 }
 0x680   : > { %v2094_v28 = vpop.f32.mrb[7].mxu0 }
 0x682   : > { %v2280_v29 = vpop.eup %2279 }
 0x683   : > { %v731_v30 = vmul.f32 %v2280_v29, %v729_v23 }
 0x685   : > { %2098 = vmatmul.mubr.msk.f32.vlgmr.msra.gmra.mrb[4].mxu1 %vm558_vm3, %v731_v30  ;;  %v1674_v30 = vld [vmem:[%s3050_s7] sm:$0xff] }
 0x686   : > { %2106 = vmatpush3.msra.mxu1 %v1220_v31  ;;  %2107 = vmatprep.mubr.msk.f32.mxu1 %vm2465_vm1, %v2466_v9  ;;  %v1675_v31 = vld [vmem:[%s3050_s7 + $0x8] sm:$0xff] }
 0x687   : > { %2115 = vmatprep.subr.mxu1 %v2466_v9 }
 0x68d   : > { %v1199_v22 = vpop.f32.mrb[8].mxu0 }
 0x68e   : > { %v1203_v32 = vsel %vm636_vm4, %v1199_v22, -1e+30  ;;  %v2104_v33 = vpop.f32.mrb[9].mxu0  ;;  %v2167_v22 = vpack.c.bf16 %v1675_v31, %v1674_v30 }
 0x68f   : > { %v1204_v34 = vsel %vm558_vm3, %v1203_v32, -inf }
 0x690   : > { %1205 = vmax.xlane.f32.xlu1 %v1204_v34 }
 0x6a1   : > { %1411 = vrot.lane.b32.xlu1 %v1406_v25, %s2490_s19  ;;  %s418_s19 = scalar_lea.vmem [#allocation8], %s2713_s30  ;;  %s2393_s30 = sshll.u32 %s2491_s13, 4  ;;  %s2394_s30 = int_to_ptr.vmem [resolvable:$false] %s2393_s30 }
 0x6a2   : > { %s1863_s28 = sshll.u32 %s418_s19, 4  ;;  %s2395_s25 = scalar_lea.vmem %s2394_s30, 256  ;;  %s3000_s28 = int_to_ptr.vmem [resolvable:$true] %s1863_s28 }
 0x6a3   : > { %s2389_s24 = scalar_lea.vmem %s3000_s28, 128  ;;  %p2396_p6 = scmp.lt.s32.totalorder %s3000_s28, %s2394_s30 }
 0x6a4   : > { %p2390_p10 = scmp.ne.s32.totalorder %s3000_s28, %s2389_s24  ;;  %p2397_p12 = scmp.lt.s32.totalorder %s2395_s25, %s2389_s24 }
 0x6a6   : > { %p2391_p7 = pnand %p2390_p10, %p3084_p5  ;;  %p2398_p0 = por %p2397_p12, %p2396_p6 }
 0x6a8   : > { %p2392_p9 = pneg %p2391_p7 }
 0x6aa   : > { %p2399_p8 = pnand %p2398_p0, %p2392_p9 }
 0x6b4   : > { %v1409_v42 = vpop.permute.xlu0 %1408 }
 0x71d   : > { %v1206_v35 = vpop.xlane.xlu1 %1205 }
 0x71e   : > { %v1207_v36 = vmax.f32 %v1206_v35, -1e+30 }
 0x720   : > { %v1211_v37 = vsub.f32 %v1203_v32, %v1207_v36  ;;  %v1208_v47 = vsub.f32 -1e+30, %v1207_v36 }
 0x721   : > { %v1412_v40 = vpop.permute.xlu1 %1411 }
 0x722   : > { %v1212_v38 = vmul.f32 1.442695, %v1211_v37  ;;  %v1209_v48 = vmul.f32 1.442695, %v1208_v47  ;;  %v2008_v37 = vld [vmem:[%s3049_s6] ss:$0 sm:$0xff] }
 0x723   : > { %v1768_v47 = vld [vmem:[%s3051_s8 + $0x28] sm:$0xff] }
 0x724   : > { %2281 = vpow2.f32 %v1212_v38 }
 0x725   : > { %2283 = vpow2.f32 %v1209_v48  ;;  %v2179_v48 = vpack.c.bf16 %v1768_v47, %v1767_v46 }
 0x72e   : > { %v2282_v39 = vpop.eup %2281 }
 0x72f   : > { %2108 = vmatmul.mubr.msk.f32.vlgmr.msra.gmra.mrb[6].mxu1 %vm558_vm3, %v2282_v39  ;;  %v1215_v41 = vsel %vm558_vm3, %v2282_v39, 0.0  ;;  %v2284_v20 = vpop.eup %2283 }
 0x730   : > { %2116 = vmatpush3.xpose.msk.msra.mxu1 %vm558_vm3, %v1412_v40  ;;  %1216 = vadd.xlane.f32.xlu0 %v1215_v41  ;;  %v1214_v50 = vmul.f32 0.0, %v2284_v20  ;;  %v1763_v40 = vld [vmem:[%s3051_s8] sm:$0xff]  ;;  %v1764_v41 = vld [vmem:[%s3051_s8 + $0x8] sm:$0xff]  ;;  %v1769_v20 = vld [vmem:[%s3051_s8 + $0x30] sm:$0xff] }
 0x731   : > { %2117 = vmatprep.mubr.msk.f32.mxu1 %vm2465_vm1, %v2466_v9  ;;  %2125 = vmatprep.subr.mxu1 %v2466_v9 }
 0x733   : > { %2118 = vmatmul.mubr.msk.f32.vlgmr.msra.gmra.mrb[8].mxu1 %vm558_vm3, %v1409_v42  ;;  %v1765_v42 = vld [vmem:[%s3051_s8 + $0x10] sm:$0xff] }
 0x734   : > { %2127 = vmatprep.mubr.msk.f32.mxu1 %vm2465_vm1, %v2466_v9  ;;  %2126 = vmatpush3.msra.mxu1 %v1582_v7 }
 0x735   : > { %2172 = vmatprep.subr.bf16.mxu1 %v2464_v6 }
 0x746   : > { %1503 = vrot.lane.b32.xlu0 %v2759_v18, %s2469_s11 }
 0x758   : > { %v1085_v43 = vpop.f32.mrb[4].mxu1 }
 0x759   : > { %v1086_v44 = vadd.f32 %v1085_v43, %v1012_v27  ;;  %v2099_v45 = vpop.f32.mrb[5].mxu1  ;;  %v2173_v43 = vpack.c.bf16 %v1764_v41, %v1763_v40 }
 0x7bd   : > { %v1217_v49 = vpop.xlane.xlu0 %1216 }
 0x7be   : > { %v1218_v51 = vadd.f32 %v1217_v49, %v1214_v50  ;;  %v1770_v49 = vld [vmem:[%s3051_s8 + $0x38] sm:$0xff] }
 0x7c0   : > { %2285 = vrcp.f32 %v1218_v51 }
 0x7c1   : > { %v1504_v56 = vpop.permute.xlu0 %1503 }
 0x7ca   : > { %v2286_v23 = vpop.eup %2285 }
 0x802   : > { %v1291_v52 = vpop.f32.mrb[6].mxu1 }
 0x803   : > { %v1295_v18 = vadd.f32 %v1291_v52, %v1214_v50  ;;  %v2109_v53 = vpop.f32.mrb[7].mxu1  ;;  %v2182_v52 = vpack.c.bf16 %v1770_v49, %v1769_v20 }
 0x805   : > { %v1297_v54 = vmul.f32 %v2286_v23, %v1295_v18 }
 0x806   : > { %v1483_v55 = vpop.f32.mrb[8].mxu1 }
 0x807   : > { %v1487_v57 = vsel %vm636_vm4, %v1483_v55, -1e+30  ;;  %2113 = vmatmul.mubr.msk.f32.vlgmr.msra.gmra.mrb[10].mxu0 %vm558_vm3, %v1297_v54  ;;  %v2119_v58 = vpop.f32.mrb[9].mxu1 }
 0x808   : > { %2121 = vmatpush3.msra.mxu0 %v1504_v56  ;;  %v1488_v61 = vsel %vm558_vm3, %v1487_v57, -inf  ;;  %2122 = vmatprep.mubr.msk.f32.mxu0 %vm2465_vm1, %v2466_v9 }
 0x809   : > { %1489 = vmax.xlane.f32.xlu1 %v1488_v61  ;;  %2166 = vmatprep.subr.bf16.mxu0 %v2464_v6 }
 0x896   : > { %v1490_v62 = vpop.xlane.xlu1 %1489 }
 0x897   : > { %v1491_v63 = vmax.f32 %v1490_v62, -1e+30 }
 0x899   : > { %v1495_v1 = vsub.f32 %v1487_v57, %v1491_v63  ;;  %v1492_v8 = vsub.f32 -1e+30, %v1491_v63 }
 0x89b   : > { %v1496_v2 = vmul.f32 1.442695, %v1495_v1  ;;  %v1493_v10 = vmul.f32 1.442695, %v1492_v8 }
 0x89d   : > { %2287 = vpow2.f32 %v1496_v2 }
 0x89e   : > { %2289 = vpow2.f32 %v1493_v10 }
 0x8a7   : > { %v2288_v3 = vpop.eup %2287 }
 0x8a8   : > { %2123 = vmatmul.mubr.msk.f32.vlgmr.msra.gmra.mrb[12].mxu0 %vm558_vm3, %v2288_v3  ;;  %v1499_v59 = vsel %vm558_vm3, %v2288_v3, 0.0  ;;  %v2290_v11 = vpop.eup %2289 }
 0x8a9   : > { %1500 = vadd.xlane.f32.xlu1 %v1499_v59  ;;  %2138 = vmatprep.mubr.msk.f32.mxu0 %vm2465_vm1, %v2466_v9  ;;  %v1498_v21 = vmul.f32 0.0, %v2290_v11 }
 0x8aa   : > { %2168 = vmatpush3.bf16.msra.mxu0 %v2167_v22 }
 0x8ab   : > { %2169 = vmatprep.subr.bf16.mxu0 %v2464_v6 }
 0x8da   : > { %v1368_v60 = vpop.f32.mrb[10].mxu0 }
 0x8db   : > { %v1372_v4 = vadd.f32 %v1368_v60, %v1086_v44  ;;  %v2114_v5 = vpop.f32.mrb[11].mxu0  ;;  %v1766_v44 = vld [vmem:[%s3051_s8 + $0x18] sm:$0xff] }
 0x8dc   : > { %v2176_v45 = vpack.c.bf16 %v1766_v44, %v1765_v42 }
 0x936   : > { %v1501_v12 = vpop.xlane.xlu1 %1500 }
 0x937   : > { %v1502_v13 = vadd.f32 %v1501_v12, %v1498_v21 }
 0x939   : > { %2291 = vrcp.f32 %v1502_v13 }
 0x943   : > { %v2292_v16 = vpop.eup %2291 }
 0x97b   : > { %v1575_v14 = vpop.f32.mrb[12].mxu0 }
 0x97c   : > { %v1579_v25 = vadd.f32 %v1575_v14, %v1498_v21  ;;  %v2124_v15 = vpop.f32.mrb[13].mxu0 }
 0x97e   : > { %v1581_v17 = vmul.f32 %v2292_v16, %v1579_v25 }
 0x980   : > { %2128 = vmatmul.mubr.msk.f32.vlgmr.msra.gmra.mrb[10].mxu1 %vm558_vm3, %v1581_v17 }
 0x981   : > { %2157 = vmatprep.mubr.msk.f32.mxu1 %vm2465_vm1, %v2466_v9  ;;  %v1677_v9 = vld [vmem:[%s3050_s7 + $0x18] sm:$0xff]  ;;  %2174 = vmatpush3.bf16.msra.mxu1 %v2173_v43 }
 0x982   : > { %2175 = vmatprep.subr.bf16.mxu1 %v2464_v6 }
 0x985   : > { %2177 = vmatpush3.bf16.msra.mxu1 %v2176_v45 }
 0x986   : > { %2178 = vmatprep.subr.bf16.mxu1 %v2464_v6 }
 0x989   : > { %2180 = vmatpush3.bf16.msra.mxu1 %v2179_v48 }
 0x98a   : > { %2181 = vmatprep.subr.bf16.mxu1 %v2464_v6 }
 0x98d   : > { %2183 = vmatpush3.bf16.msra.mxu1 %v2182_v52 }
 0xa53   : > { %v1652_v19 = vpop.f32.mrb[10].mxu1 }
 0xa54   : > { %v1656_v24 = vadd.f32 %v1652_v19, %v1372_v4  ;;  %v2129_v26 = vpop.f32.mrb[11].mxu1 }
 0xa56   : > { %v1657_v27 = vadd.f32 %v1656_v24, %v2727_v0  ;;  %v1676_v0 = vld [vmem:[%s3050_s7 + $0x10] sm:$0xff] }
 0xa57   : > { %v2170_v32 = vpack.c.bf16 %v1677_v9, %v1676_v0 }
 0xa58   : > { %v1658_v28 = vmul.f32 %v1657_v27, %v1657_v27 }
 0xa59   : > { %2171 = vmatpush3.bf16.msra.mxu0 %v2170_v32 }
 0xa5a   : > { %v1659_v29 = vsel %vm421_vm0, %v1658_v28, 0.0 }
 0xa5b   : > { %1660 = vadd.xlane.f32.xlu1 %v1659_v29 }
 0xae8   : > { %v1661_v33 = vpop.xlane.xlu1 %1660 }
 0xae9   : > { %v1662_v34 = vmul.f32 0.03125, %v1661_v33 }
 0xaeb   : > { %v1663_v35 = vadd.f32 1e-06, %v1662_v34 }
 0xaed   : > { %2293 = vrsqrt.f32 %v1663_v35 }
 0xaf7   : > { %v2294_v36 = vpop.eup %2293 }
 0xaf8   : > { %v1665_v38 = vmul.f32 %v2294_v36, %v1657_v27 }
 0xafa   : > { %v1673_v39 = vmul.f32 %v2008_v37, %v1665_v38 }
 0xafc   : > { %2139 = vmatmul.mubr.msk.f32.vlgmr.msra.gmra.mrb[14].mxu0 %vm421_vm0, %v1673_v39 }
 0xbcf   : > { %v1747_v50 = vpop.f32.mrb[14].mxu0 }
 0xbd0   : > { %1759 = vrot.lane.b32.xlu0 %v1747_v50, %s2483_s1  ;;  %v2140_v51 = vpop.f32.mrb[15].mxu0  ;;  %v2010_v18 = vmul.f32 -1.442695, %v1747_v50 }
 0xbd2   : > { %2295 = vpow2.f32 %v2010_v18 }
 0xbdc   : > { %v2296_v53 = vpop.eup %2295 }
 0xbdd   : > { %v1754_v23 = vadd.f32 1.0, %v2296_v53 }
 0xbdf   : > { %2297 = vrcp.f32 %v1754_v23 }
 0xbe9   : > { %v2298_v54 = vpop.eup %2297 }
 0xbea   : > { %v1757_v55 = vmul.f32 %v2298_v54, %v1747_v50 }
 0xc42   : > { %v1760_v56 = vpop.permute.xlu0 %1759 }
 0xc43   : > { %v1762_v57 = vmul.f32 %v1760_v56, %v1757_v55 }
 0xc45   : > { %1772 = vrot.lane.b32.xlu1 %v1762_v57, %s2483_s1  ;;  %s1850_s1 = scalar_lea.sflag [#allocation4], %s2710_s18 }
 0xcb7   : > { %v1773_v58 = vpop.permute.xlu1 %1772 }
 0xcb8   : > { %2158 = vmatmul.mubr.msk.f32.vlgmr.msra.gmra.mrb[12].mxu1 %vm1774_vm5, %v1773_v58 }
 0xd8b   : > { %v1843_v6 = vpop.f32.mrb[12].mxu1 }
 0xd8c   : > { %v1847_v61 = vadd.f32 %v1843_v6, %v1657_v27  ;;  %v2159_v62 = vpop.f32.mrb[13].mxu1 }
 0xd8e   : > { %1848 = vst.msk [vmem:[%s418_s19] sm:$0xff] %vm421_vm0, %v1847_v61 }
 0xd8f   : > { %2402 = shalt.err (!%p2399_p8)
}
 0xd90   : > { %s2403_s18 = scalar_lea.hbm %s2998_s23, 128  ;;  %s2407_s26 = scalar_lea.hbm %s3052_s9, 256 }
 0xd91   : > { %p2404_p13 = scmp.ne.s32.totalorder %s2998_s23, %s2403_s18  ;;  %p2408_p3 = scmp.lt.u32.totalorder %s2998_s23, %s3052_s9 }
 0xd92   : > { %p2409_p4 = scmp.lt.u32.totalorder %s2407_s26, %s2403_s18  ;;  %p2411_p10 = scmp.lt.u32.totalorder %s2403_s18, %s2998_s23 }
 0xd93   : > { %p2405_p11 = pnand %p2404_p13, %p3084_p5 }
 0xd94   : > { %p2410_p2 = por %p2409_p4, %p2408_p3 }
 0xd95   : > { %p2406_p1 = pneg %p2405_p11 }
 0xd96   : > { %p2412_p7 = por %p2411_p10, %p2410_p2 }
 0xd98   : > { %p2413_p9 = pnand %p2412_p7, %p2406_p1 }
 0xd9a   : > { %2416 = shalt.err (!%p2413_p9)
}
 0xd9b   : > { %2190 = dma.vmem_to_hbm [thread:$0]  (%p3084_p5), %s3000_s28, 128, %s2998_s23, %s1850_s1  }
 0xd9c PF: > { %s3085_s21 = sld [smem:[#allocation12_spill]]  ;;  %s3086_s27 = sld [smem:[#allocation17_spill]] }
 0xd9d   : > { %s3087_s15 = sld [smem:[#allocation14_spill]] }
 0xda2   : > { %s1875_s14 = sand.u32 1, %s3085_s21   ;;  %p3088_p6 = scmp.ne.s32.totalorder %s3086_s27, 0 }
 0xda3   : > { %p3089_p12 = scmp.ge.s32.totalorder %s3087_s15, 2  ;;  %s1876_s19 = scalar_lea.sflag [#allocation4], %s1875_s14 }
 0xda5   : > { %p2203_p0 = pnand %p3089_p12, %p3088_p6 }
 0xda7   : > { %2442 = dma.done.wait (!%p2203_p0), %s1876_s19, 128  }
 0xda8   : > { %2444 = vsyncadd (!%p2203_p0), %s1876_s19, 4294967168  ;;  %s3090_s12 = sld [smem:[#allocation15_spill]]  ;;  %s3091_s29 = sld [smem:[#allocation13_spill]] }
 0xda9   : > { %s3092_s11 = sld [smem:[#allocation16_spill]]  ;;  %s3093_s30 = smov %s2451_s10 }
 0xdae   : > { %p25_p8 = scmp.ge.s32.totalorder %s3090_s12, 4   ;;  %s3094_s10 = smov %s3091_s29 }
 0xdb0   :  { %27 = sbr.rel (!%p25_p8) target bundleno = 9 (0x9), region = 125 }
 0xdb7   :  { %1881 = vsyncpa [#allocation3], 1 }
 0xdb8   :  { %1883 = vsyncpa [#allocation3 + $0x1], 1 }
 0xdb9   :  { %1884 = vsyncpa [#allocation6], 1 }
 0xdba   :  { %1886 = vsyncpa [#allocation6 + $0x1], 1 }
 0xdbb   :  { %1887 = vsyncpa [#allocation4], 1 }
 0xdbc   :  { %1889 = vsyncpa [#allocation4 + $0x1], 1 }

</bundles_post_ra>
